<compile_context>
chip_gen: v6e
topology: v6e:2x2x1
jax: 0.10.0
libtpu: 0.0.40
codegen_flags: <defaults>
</compile_context>

<pallas_src>
import jax
import jax.numpy as jnp
from jax.experimental import pallas as pl
from jax.experimental.pallas import tpu as pltpu


# --------------------------------------------------------------------------------------
# Kernel: one grid step = CHUNK decoder steps
# --------------------------------------------------------------------------------------
def decoder_chunk_kernel(
    # streamed per-chunk input: (CHUNK, B, M + 2P + Ha + Hd)
    fused_ref,
    # resident inputs
    memory_ref, pmem_ref, amask_ref,
    wp1_ref, wp2_ref,
    w_att_ref, ba_ref,
    wq_ref, v_ref, wla_ref,
    w_dec_ref, bd_ref,
    w_proj_ref, b_proj_ref,
    # streamed per-chunk outputs
    melgate_ref, align_ref,
    # persistent recurrent state (VMEM scratch, lives across grid steps)
    att_h, att_c, dec_h, dec_c, attn_w, attn_cum, ctx,
):
    f32 = jnp.float32
    B, T, E = memory_ref.shape
    M, P = wp1_ref.shape
    Ha, A = wq_ref.shape
    Hd = dec_h.shape[1]
    K2 = wla_ref.shape[0]
    K = K2 // 2
    pad = (K - 1) // 2
    CHUNK = fused_ref.shape[0]

    # ---- recurrent-state init (first grid step only) -------------------------------
    @pl.when(pl.program_id(0) == 0)
    def _init():
        att_h[...] = jnp.zeros_like(att_h)
        att_c[...] = jnp.zeros_like(att_c)
        dec_h[...] = jnp.zeros_like(dec_h)
        dec_c[...] = jnp.zeros_like(dec_c)
        attn_w[...] = jnp.zeros_like(attn_w)
        attn_cum[...] = jnp.zeros_like(attn_cum)
        ctx[...] = jnp.zeros_like(ctx)

    # hoist loop-invariant loads
    mem = memory_ref[...]                       # (B, T, E)
    pmem = pmem_ref[...]                        # (B, T, A)  processed_memory
    amask = amask_ref[...]                      # (B, T)     additive 0 / -1e30 mask
    v_row = v_ref[...].reshape(1, 1, A)
    wp1 = wp1_ref[...]
    wp2 = wp2_ref[...]
    w_att = w_att_ref[...]
    ba = ba_ref[...]
    wq = wq_ref[...]
    wla = wla_ref[...]                          # (2K, A) = conv_weight @ location_dense
    w_dec = w_dec_ref[...]
    bd = bd_ref[...]
    w_proj = w_proj_ref[...]                    # (Hd+E, M+1)  mel + gate fused
    b_proj = b_proj_ref[...]

    @pl.loop(0, CHUNK)
    def _step(j):
        xall = fused_ref[j]                                      # (B, M+2P+Ha+Hd)
        x = xall[:, :M]
        d1 = xall[:, M:M + P]
        d2 = xall[:, M + P:M + 2 * P]
        datt = xall[:, M + 2 * P:M + 2 * P + Ha]
        ddec = xall[:, M + 2 * P + Ha:M + 2 * P + Ha + Hd]

        # ---- prenet (ReLU + dropout p=0.5, training=True) ---------------------------
        h = jnp.maximum(jnp.dot(x, wp1, preferred_element_type=f32), 0.0) * d1
        h = jnp.maximum(jnp.dot(h, wp2, preferred_element_type=f32), 0.0) * d2

        # ---- attention LSTMCell, single fused matmul --------------------------------
        xin = jnp.concatenate([h, ctx[...], att_h[...]], axis=1)      # (B, P+E+Ha)
        g = jnp.dot(xin, w_att, preferred_element_type=f32) + ba      # (B, 4*Ha)
        i_g = jax.nn.sigmoid(g[:, 0 * Ha:1 * Ha])
        f_g = jax.nn.sigmoid(g[:, 1 * Ha:2 * Ha])
        g_g = jnp.tanh(g[:, 2 * Ha:3 * Ha])
        o_g = jax.nn.sigmoid(g[:, 3 * Ha:4 * Ha])
        c_att = f_g * att_c[...] + i_g * g_g
        h_att = o_g * jnp.tanh(c_att) * datt                          # attention dropout
        att_c[...] = c_att
        att_h[...] = h_att

        # ---- location-sensitive attention (im2col + one MXU matmul) ------------------
        prev_w = attn_w[...]                                          # (B, T)
        cum_w = attn_cum[...]                                         # (B, T)
        shifts = []
        for src in (prev_w, cum_w):                                   # channel order: prev, cum
            for k in range(K):
                d = k - pad                                           # shifted[t] = src[t+d]
                if d == 0:
                    s = src
                elif d > 0:
                    s = jnp.concatenate([src[:, d:], jnp.zeros((B, d), f32)], axis=1)
                else:
                    s = jnp.concatenate([jnp.zeros((B, -d), f32), src[:, :T + d]], axis=1)
                shifts.append(s)
        cols = jnp.concatenate([s[:, :, None] for s in shifts], axis=-1)   # (B, T, 2K)
        pa = jnp.dot(cols.reshape(B * T, K2), wla,
                     preferred_element_type=f32).reshape(B, T, A)          # conv+dense fused
        pq = jnp.dot(h_att, wq, preferred_element_type=f32)[:, None, :]    # (B, 1, A)

        e = jnp.tanh(pq + pa + pmem)                                  # (B, T, A)
        energies = jnp.sum(e * v_row, axis=-1) + amask                # (B, T), masked

        mx = jnp.max(energies, axis=1, keepdims=True)
        ew = jnp.exp(energies - mx)
        w = ew / jnp.sum(ew, axis=1, keepdims=True)                   # softmax over T
        attn_w[...] = w
        attn_cum[...] = cum_w + w

        # attention_context = w @ memory  (batched MXU matmul)
        new_ctx = jnp.einsum('bqt,bte->bqe', w[:, None, :], mem,
                             preferred_element_type=f32)[:, 0, :]     # (B, E)
        ctx[...] = new_ctx

        # ---- decoder LSTMCell, single fused matmul ----------------------------------
        xin2 = jnp.concatenate([h_att, new_ctx, dec_h[...]], axis=1)  # (B, Ha+E+Hd)
        g2 = jnp.dot(xin2, w_dec, preferred_element_type=f32) + bd    # (B, 4*Hd)
        i2 = jax.nn.sigmoid(g2[:, 0 * Hd:1 * Hd])
        f2 = jax.nn.sigmoid(g2[:, 1 * Hd:2 * Hd])
        gg2 = jnp.tanh(g2[:, 2 * Hd:3 * Hd])
        o2 = jax.nn.sigmoid(g2[:, 3 * Hd:4 * Hd])
        c_dec = f2 * dec_c[...] + i2 * gg2
        h_dec = o2 * jnp.tanh(c_dec) * ddec                           # decoder dropout
        dec_c[...] = c_dec
        dec_h[...] = h_dec

        # ---- projection + gate, fused into one matmul --------------------------------
        pin = jnp.concatenate([h_dec, new_ctx], axis=1)               # (B, Hd+E)
        out = jnp.dot(pin, w_proj, preferred_element_type=f32) + b_proj   # (B, M+1)

        melgate_ref[j] = out
        align_ref[j] = w


# --------------------------------------------------------------------------------------
# Wrapper: input parsing, param fusion, pallas_call, output parsing
# --------------------------------------------------------------------------------------
def decoder_forward(params, hp, memory, decoder_inputs, memory_lengths, dropout_key,
                    chunk=4):
    B, T_in, E = memory.shape
    n_mel = hp["n_mel_channels"]
    nf = hp["n_frames_per_step"]
    M = n_mel * nf
    P = hp["prenet_dim"]
    Ha = hp["attention_rnn_dim"]
    Hd = hp["decoder_rnn_dim"]
    A = hp["attention_dim"]
    K = hp["attention_location_kernel_size"]

    # parse_decoder_inputs: (B, n_mel, T_mel) -> (T_dec, B, M), prepend go frame
    di = jnp.transpose(decoder_inputs, (0, 2, 1))
    T_mel = di.shape[1]
    T_dec = T_mel // nf
    di = jnp.reshape(di, (B, T_dec, M))
    di = jnp.transpose(di, (1, 0, 2))
    go = jnp.zeros((1, B, M), jnp.float32)
    dec_in = jnp.concatenate([go, di], axis=0)[:T_dec]               # inputs consumed

    # deterministic inverted-dropout masks
    k1, k2, k3, k4 = jax.random.split(dropout_key, 4)

    def dmask(k, shape, p):
        keep = jax.random.bernoulli(k, 1.0 - p, shape).astype(jnp.float32)
        return keep / (1.0 - p)

    drop1 = dmask(k1, (T_dec, B, P), 0.5)
    drop2 = dmask(k2, (T_dec, B, P), 0.5)
    dratt = dmask(k3, (T_dec, B, Ha), hp["p_attention_dropout"])
    drdec = dmask(k4, (T_dec, B, Hd), hp["p_decoder_dropout"])

    # single fused per-step input stream
    fused = jnp.concatenate([dec_in, drop1, drop2, dratt, drdec], axis=-1)
    Din = fused.shape[-1]

    # pad decode axis to a multiple of chunk (padded steps are sliced away afterwards)
    n_chunks = -(-T_dec // chunk)
    T_pad = n_chunks * chunk
    if T_pad != T_dec:
        fused = jnp.concatenate(
            [fused, jnp.zeros((T_pad - T_dec, B, Din), jnp.float32)], axis=0)

    # hoisted memory_layer + additive attention mask (0 valid, -1e30 padded)
    pmem = jnp.einsum('bte,ea->bta', memory, params["wm"]).astype(jnp.float32)
    ids = jnp.arange(T_in)[None, :]
    valid = ids < memory_lengths[:, None]
    amask = jnp.where(valid, 0.0, -1e30).astype(jnp.float32)

    # fused weights
    w_att = jnp.concatenate([params["wa_xp"], params["wa_xc"], params["wa_h"]], axis=0)
    w_dec = jnp.concatenate([params["wd_xh"], params["wd_xc"], params["wd_h"]], axis=0)
    wla = jnp.dot(params["wloc"], params["wld"])                      # (2K, A)
    w_proj = jnp.concatenate([
        jnp.concatenate([params["wpr_h"], params["wg_h"].T], axis=1),
        jnp.concatenate([params["wpr_c"], params["wg_c"].T], axis=1)], axis=0)  # (Hd+E, M+1)
    b_proj = jnp.concatenate([params["bpr"], params["bg"]], axis=1)             # (1, M+1)

    def full(shp):
        return pl.BlockSpec(shp, lambda *i, _n=len(shp): (0,) * _n)

    def chunked(shp):
        return pl.BlockSpec((chunk,) + shp, lambda i: (i, 0, 0))

    in_specs = [
        chunked((B, Din)),
        full((B, T_in, E)), full((B, T_in, A)), full((B, T_in)),
        full((M, P)), full((P, P)),
        full((P + E + Ha, 4 * Ha)), full((1, 4 * Ha)),
        full((Ha, A)), full((1, A)), full((2 * K, A)),
        full((Ha + E + Hd, 4 * Hd)), full((1, 4 * Hd)),
        full((Hd + E, M + 1)), full((1, M + 1)),
    ]
    out_specs = [chunked((B, M + 1)), chunked((B, T_in))]
    out_shape = [
        jax.ShapeDtypeStruct((T_pad, B, M + 1), jnp.float32),
        jax.ShapeDtypeStruct((T_pad, B, T_in), jnp.float32),
    ]
    scratch_shapes = [
        pltpu.VMEM((B, Ha), jnp.float32), pltpu.VMEM((B, Ha), jnp.float32),
        pltpu.VMEM((B, Hd), jnp.float32), pltpu.VMEM((B, Hd), jnp.float32),
        pltpu.VMEM((B, T_in), jnp.float32), pltpu.VMEM((B, T_in), jnp.float32),
        pltpu.VMEM((B, E), jnp.float32),
    ]

    grid_spec = pltpu.PrefetchScalarGridSpec(
        num_scalar_prefetch=0,
        grid=(n_chunks,),
        in_specs=in_specs,
        out_specs=out_specs,
        scratch_shapes=scratch_shapes,
    )

    melgate_steps, align_steps = pl.pallas_call(
        decoder_chunk_kernel,
        grid_spec=grid_spec,
        out_shape=out_shape,
        compiler_params=pltpu.CompilerParams(
            dimension_semantics=("arbitrary",),      # sequential recurrence
            vmem_limit_bytes=32 * 1024 * 1024,       # raise above v5e's 16 MiB default
        ),
    )(
        fused, memory, pmem, amask,
        params["wp1"], params["wp2"],
        w_att, params["ba"],
        params["wq"], params["v"], wla,
        w_dec, params["bd"],
        w_proj, b_proj,
    )

    # parse_decoder_outputs
    melgate_steps = melgate_steps[:T_dec]
    align_steps = align_steps[:T_dec]
    mel_steps = melgate_steps[:, :, :M]                               # (T_dec, B, M)
    gate_steps = melgate_steps[:, :, M]                               # (T_dec, B)

    mel_outputs = jnp.transpose(mel_steps, (1, 0, 2))                 # (B, T_dec, M)
    mel_outputs = jnp.reshape(mel_outputs, (B, T_dec * nf, n_mel))
    mel_outputs = jnp.transpose(mel_outputs, (0, 2, 1))               # (B, n_mel, T_mel)
    gate_outputs = jnp.transpose(gate_steps, (1, 0))                  # (B, T_dec)
    alignments = jnp.transpose(align_steps, (1, 0, 2))                # (B, T_dec, T_in)
    return mel_outputs, gate_outputs, alignments


# --------------------------------------------------------------------------------------
# Deterministic synthetic parameters
# --------------------------------------------------------------------------------------
def init_params(key, hp, E):
    n_mel = hp["n_mel_channels"]
    M = n_mel * hp["n_frames_per_step"]
    P = hp["prenet_dim"]
    Ha = hp["attention_rnn_dim"]
    Hd = hp["decoder_rnn_dim"]
    A = hp["attention_dim"]
    F = hp["attention_location_n_filters"]
    K = hp["attention_location_kernel_size"]

    keys = iter(jax.random.split(key, 32))

    def w(shape, fan_in):
        return jax.random.normal(next(keys), shape, jnp.float32) / jnp.sqrt(float(fan_in))

    return dict(
        # prenet (no bias)
        wp1=w((M, P), M), wp2=w((P, P), P),
        # attention LSTMCell (input split: prenet part / context part)
        wa_xp=w((P, 4 * Ha), P + E), wa_xc=w((E, 4 * Ha), P + E),
        wa_h=w((Ha, 4 * Ha), Ha), ba=w((1, 4 * Ha), Ha),
        # attention: query / memory / v / location conv / location dense (all no bias)
        wq=w((Ha, A), Ha), wm=w((E, A), E), v=w((1, A), A),
        wloc=w((2 * K, F), 2 * K), wld=w((F, A), F),
        # decoder LSTMCell (input split: attn-hidden part / context part)
        wd_xh=w((Ha, 4 * Hd), Ha + E), wd_xc=w((E, 4 * Hd), Ha + E),
        wd_h=w((Hd, 4 * Hd), Hd), bd=w((1, 4 * Hd), Hd),
        # linear projection (with bias) and gate layer (with bias)
        wpr_h=w((Hd, M), Hd + E), wpr_c=w((E, M), Hd + E), bpr=w((1, M), Hd + E),
        wg_h=w((1, Hd), Hd + E), wg_c=w((1, E), Hd + E), bg=w((1, 1), Hd + E),
    )


# --------------------------------------------------------------------------------------
if __name__ == "__main__":
    hp = dict(
        n_mel_channels=4,
        n_frames_per_step=1,
        encoder_embedding_dim=32,
        attention_rnn_dim=32,
        decoder_rnn_dim=32,
        prenet_dim=16,
        attention_dim=16,
        attention_location_n_filters=8,
        attention_location_kernel_size=3,
        p_attention_dropout=0.1,
        p_decoder_dropout=0.1,
    )

    B, T_in, E = 2, 16, hp["encoder_embedding_dim"]
    T_mel = 8

    root = jax.random.PRNGKey(0)
    k_param, k_mem, k_dec, k_drop = jax.random.split(root, 4)

    params = init_params(k_param, hp, E)
    memory = jax.random.normal(k_mem, (B, T_in, E), jnp.float32)
    decoder_inputs = jax.random.normal(
        k_dec, (B, hp["n_mel_channels"], T_mel), jnp.float32)
    memory_lengths = jnp.array([16, 12], dtype=jnp.int32)

    mel_outputs, gate_outputs, alignments = decoder_forward(
        params, hp, memory, decoder_inputs, memory_lengths, k_drop, chunk=4)

    jax.block_until_ready((mel_outputs, gate_outputs, alignments))
    assert mel_outputs.shape == (B, hp["n_mel_channels"], T_mel)
    assert gate_outputs.shape == (B, T_mel)
    assert alignments.shape == (B, T_mel, T_in)
    assert bool(jnp.all(jnp.isfinite(mel_outputs)))
    assert bool(jnp.all(jnp.isfinite(gate_outputs)))
    assert bool(jnp.all(jnp.isfinite(alignments)))
    # attention weights of a softmax must sum to ~1 per step
    assert bool(jnp.all(jnp.abs(jnp.sum(alignments, axis=-1) - 1.0) < 1e-3))
    print("KERNEL_OK")
</pallas_src>

<mosaic_0001>
module attributes {stable_mosaic.version = 11 : i64} {
  func.func @decoder_chunk_kernel(%arg0: i32, %arg1: memref<4x2x100xf32, #tpu.memory_space<vmem>>, %arg2: memref<2x16x32xf32, #tpu.memory_space<vmem>>, %arg3: memref<2x16x16xf32, #tpu.memory_space<vmem>>, %arg4: memref<2x16xf32, #tpu.memory_space<vmem>>, %arg5: memref<4x16xf32, #tpu.memory_space<vmem>>, %arg6: memref<16x16xf32, #tpu.memory_space<vmem>>, %arg7: memref<80x128xf32, #tpu.memory_space<vmem>>, %arg8: memref<1x128xf32, #tpu.memory_space<vmem>>, %arg9: memref<32x16xf32, #tpu.memory_space<vmem>>, %arg10: memref<1x16xf32, #tpu.memory_space<vmem>>, %arg11: memref<6x16xf32, #tpu.memory_space<vmem>>, %arg12: memref<96x128xf32, #tpu.memory_space<vmem>>, %arg13: memref<1x128xf32, #tpu.memory_space<vmem>>, %arg14: memref<64x5xf32, #tpu.memory_space<vmem>>, %arg15: memref<1x5xf32, #tpu.memory_space<vmem>>, %arg16: memref<4x2x5xf32, #tpu.memory_space<vmem>>, %arg17: memref<4x2x16xf32, #tpu.memory_space<vmem>>, %arg18: memref<2x32xf32, #tpu.memory_space<vmem>>, %arg19: memref<2x32xf32, #tpu.memory_space<vmem>>, %arg20: memref<2x32xf32, #tpu.memory_space<vmem>>, %arg21: memref<2x32xf32, #tpu.memory_space<vmem>>, %arg22: memref<2x16xf32, #tpu.memory_space<vmem>>, %arg23: memref<2x16xf32, #tpu.memory_space<vmem>>, %arg24: memref<2x32xf32, #tpu.memory_space<vmem>>) attributes {dimension_semantics = [#tpu.dimension_semantics<arbitrary>], iteration_bounds = array<i64: 2>, scalar_prefetch = 0 : i64, scratch_operands = 7 : i64, tpu.core_type = #tpu.core_type<tc>, window_params = [{transform_indices = @transform_0, window_bounds = array<i64: 4, 2, 100>}, {pipeline_mode = #tpu.pipeline_mode<synchronous>, transform_indices = @transform_1, window_bounds = array<i64: 2, 16, 32>}, {pipeline_mode = #tpu.pipeline_mode<synchronous>, transform_indices = @transform_2, window_bounds = array<i64: 2, 16, 16>}, {pipeline_mode = #tpu.pipeline_mode<synchronous>, transform_indices = @transform_3, window_bounds = array<i64: 2, 16>}, {pipeline_mode = #tpu.pipeline_mode<synchronous>, transform_indices = @transform_4, window_bounds = array<i64: 4, 16>}, {pipeline_mode = #tpu.pipeline_mode<synchronous>, transform_indices = @transform_5, window_bounds = array<i64: 16, 16>}, {pipeline_mode = #tpu.pipeline_mode<synchronous>, transform_indices = @transform_6, window_bounds = array<i64: 80, 128>}, {pipeline_mode = #tpu.pipeline_mode<synchronous>, transform_indices = @transform_7, window_bounds = array<i64: 1, 128>}, {pipeline_mode = #tpu.pipeline_mode<synchronous>, transform_indices = @transform_8, window_bounds = array<i64: 32, 16>}, {pipeline_mode = #tpu.pipeline_mode<synchronous>, transform_indices = @transform_9, window_bounds = array<i64: 1, 16>}, {pipeline_mode = #tpu.pipeline_mode<synchronous>, transform_indices = @transform_10, window_bounds = array<i64: 6, 16>}, {pipeline_mode = #tpu.pipeline_mode<synchronous>, transform_indices = @transform_11, window_bounds = array<i64: 96, 128>}, {pipeline_mode = #tpu.pipeline_mode<synchronous>, transform_indices = @transform_12, window_bounds = array<i64: 1, 128>}, {pipeline_mode = #tpu.pipeline_mode<synchronous>, transform_indices = @transform_13, window_bounds = array<i64: 64, 5>}, {pipeline_mode = #tpu.pipeline_mode<synchronous>, transform_indices = @transform_14, window_bounds = array<i64: 1, 5>}, {transform_indices = @transform_15, window_bounds = array<i64: 4, 2, 5>}, {transform_indices = @transform_16, window_bounds = array<i64: 4, 2, 16>}]} {
    %c0_i32 = arith.constant 0 : i32
    %0 = arith.cmpi eq, %arg0, %c0_i32 : i32
    %1 = arith.extui %0 : i1 to i32
    %c0_i32_0 = arith.constant 0 : i32
    %2 = arith.cmpi ne, %1, %c0_i32_0 : i32
    scf.if %2 {
      %cst = arith.constant 0.000000e+00 : f32
      %19 = vector.broadcast %cst : f32 to vector<2x32xf32>
      %c0_32 = arith.constant 0 : index
      %c0_33 = arith.constant 0 : index
      %20 = vector.load %arg18[%c0_32, %c0_33] : memref<2x32xf32, #tpu.memory_space<vmem>>, vector<2x32xf32>
      tpu.vector_store %arg18[%c0_32, %c0_33], %19 {strides = array<i32>} : memref<2x32xf32, #tpu.memory_space<vmem>>, vector<2x32xf32>,
      %cst_34 = arith.constant 0.000000e+00 : f32
      %21 = vector.broadcast %cst_34 : f32 to vector<2x32xf32>
      %c0_35 = arith.constant 0 : index
      %c0_36 = arith.constant 0 : index
      %22 = vector.load %arg19[%c0_35, %c0_36] : memref<2x32xf32, #tpu.memory_space<vmem>>, vector<2x32xf32>
      tpu.vector_store %arg19[%c0_35, %c0_36], %21 {strides = array<i32>} : memref<2x32xf32, #tpu.memory_space<vmem>>, vector<2x32xf32>,
      %cst_37 = arith.constant 0.000000e+00 : f32
      %23 = vector.broadcast %cst_37 : f32 to vector<2x32xf32>
      %c0_38 = arith.constant 0 : index
      %c0_39 = arith.constant 0 : index
      %24 = vector.load %arg20[%c0_38, %c0_39] : memref<2x32xf32, #tpu.memory_space<vmem>>, vector<2x32xf32>
      tpu.vector_store %arg20[%c0_38, %c0_39], %23 {strides = array<i32>} : memref<2x32xf32, #tpu.memory_space<vmem>>, vector<2x32xf32>,
      %cst_40 = arith.constant 0.000000e+00 : f32
      %25 = vector.broadcast %cst_40 : f32 to vector<2x32xf32>
      %c0_41 = arith.constant 0 : index
      %c0_42 = arith.constant 0 : index
      %26 = vector.load %arg21[%c0_41, %c0_42] : memref<2x32xf32, #tpu.memory_space<vmem>>, vector<2x32xf32>
      tpu.vector_store %arg21[%c0_41, %c0_42], %25 {strides = array<i32>} : memref<2x32xf32, #tpu.memory_space<vmem>>, vector<2x32xf32>,
      %cst_43 = arith.constant 0.000000e+00 : f32
      %27 = vector.broadcast %cst_43 : f32 to vector<2x16xf32>
      %c0_44 = arith.constant 0 : index
      %c0_45 = arith.constant 0 : index
      %28 = vector.load %arg22[%c0_44, %c0_45] : memref<2x16xf32, #tpu.memory_space<vmem>>, vector<2x16xf32>
      tpu.vector_store %arg22[%c0_44, %c0_45], %27 {strides = array<i32>} : memref<2x16xf32, #tpu.memory_space<vmem>>, vector<2x16xf32>,
      %cst_46 = arith.constant 0.000000e+00 : f32
      %29 = vector.broadcast %cst_46 : f32 to vector<2x16xf32>
      %c0_47 = arith.constant 0 : index
      %c0_48 = arith.constant 0 : index
      %30 = vector.load %arg23[%c0_47, %c0_48] : memref<2x16xf32, #tpu.memory_space<vmem>>, vector<2x16xf32>
      tpu.vector_store %arg23[%c0_47, %c0_48], %29 {strides = array<i32>} : memref<2x16xf32, #tpu.memory_space<vmem>>, vector<2x16xf32>,
      %cst_49 = arith.constant 0.000000e+00 : f32
      %31 = vector.broadcast %cst_49 : f32 to vector<2x32xf32>
      %c0_50 = arith.constant 0 : index
      %c0_51 = arith.constant 0 : index
      %32 = vector.load %arg24[%c0_50, %c0_51] : memref<2x32xf32, #tpu.memory_space<vmem>>, vector<2x32xf32>
      tpu.vector_store %arg24[%c0_50, %c0_51], %31 {strides = array<i32>} : memref<2x32xf32, #tpu.memory_space<vmem>>, vector<2x32xf32>,
    } else {
    }
    %c0 = arith.constant 0 : index
    %c0_1 = arith.constant 0 : index
    %c0_2 = arith.constant 0 : index
    %3 = vector.load %arg2[%c0, %c0_1, %c0_2] : memref<2x16x32xf32, #tpu.memory_space<vmem>>, vector<2x16x32xf32>
    %c0_3 = arith.constant 0 : index
    %c0_4 = arith.constant 0 : index
    %c0_5 = arith.constant 0 : index
    %4 = vector.load %arg3[%c0_3, %c0_4, %c0_5] : memref<2x16x16xf32, #tpu.memory_space<vmem>>, vector<2x16x16xf32>
    %c0_6 = arith.constant 0 : index
    %c0_7 = arith.constant 0 : index
    %5 = vector.load %arg4[%c0_6, %c0_7] : memref<2x16xf32, #tpu.memory_space<vmem>>, vector<2x16xf32>
    %c0_8 = arith.constant 0 : index
    %c0_9 = arith.constant 0 : index
    %6 = vector.load %arg10[%c0_8, %c0_9] : memref<1x16xf32, #tpu.memory_space<vmem>>, vector<1x16xf32>
    %7 = vector.shape_cast %6 : vector<1x16xf32> to vector<1x1x16xf32>
    %c0_10 = arith.constant 0 : index
    %c0_11 = arith.constant 0 : index
    %8 = vector.load %arg5[%c0_10, %c0_11] : memref<4x16xf32, #tpu.memory_space<vmem>>, vector<4x16xf32>
    %c0_12 = arith.constant 0 : index
    %c0_13 = arith.constant 0 : index
    %9 = vector.load %arg6[%c0_12, %c0_13] : memref<16x16xf32, #tpu.memory_space<vmem>>, vector<16x16xf32>
    %c0_14 = arith.constant 0 : index
    %c0_15 = arith.constant 0 : index
    %10 = vector.load %arg7[%c0_14, %c0_15] : memref<80x128xf32, #tpu.memory_space<vmem>>, vector<80x128xf32>
    %c0_16 = arith.constant 0 : index
    %c0_17 = arith.constant 0 : index
    %11 = vector.load %arg8[%c0_16, %c0_17] : memref<1x128xf32, #tpu.memory_space<vmem>>, vector<1x128xf32>
    %c0_18 = arith.constant 0 : index
    %c0_19 = arith.constant 0 : index
    %12 = vector.load %arg9[%c0_18, %c0_19] : memref<32x16xf32, #tpu.memory_space<vmem>>, vector<32x16xf32>
    %c0_20 = arith.constant 0 : index
    %c0_21 = arith.constant 0 : index
    %13 = vector.load %arg11[%c0_20, %c0_21] : memref<6x16xf32, #tpu.memory_space<vmem>>, vector<6x16xf32>
    %c0_22 = arith.constant 0 : index
    %c0_23 = arith.constant 0 : index
    %14 = vector.load %arg12[%c0_22, %c0_23] : memref<96x128xf32, #tpu.memory_space<vmem>>, vector<96x128xf32>
    %c0_24 = arith.constant 0 : index
    %c0_25 = arith.constant 0 : index
    %15 = vector.load %arg13[%c0_24, %c0_25] : memref<1x128xf32, #tpu.memory_space<vmem>>, vector<1x128xf32>
    %c0_26 = arith.constant 0 : index
    %c0_27 = arith.constant 0 : index
    %16 = vector.load %arg14[%c0_26, %c0_27] : memref<64x5xf32, #tpu.memory_space<vmem>>, vector<64x5xf32>
    %c0_28 = arith.constant 0 : index
    %c0_29 = arith.constant 0 : index
    %17 = vector.load %arg15[%c0_28, %c0_29] : memref<1x5xf32, #tpu.memory_space<vmem>>, vector<1x5xf32>
    %c0_i32_30 = arith.constant 0 : i32
    %c4_i32 = arith.constant 4 : i32
    %18 = arith.addi %c0_i32_30, %c4_i32 : i32
    %c1_i32 = arith.constant 1 : i32
    scf.for %arg25 = %c0_i32_30 to %18 step %c1_i32  : i32 {
      %c1_i32_32 = arith.constant 1 : i32
      %19 = arith.muli %arg25, %c1_i32_32 : i32
      %c0_i32_33 = arith.constant 0 : i32
      %20 = arith.addi %c0_i32_33, %19 : i32
      %21 = arith.index_cast %20 : i32 to index
      %c0_34 = arith.constant 0 : index
      %c0_35 = arith.constant 0 : index
      %22 = vector.load %arg1[%21, %c0_34, %c0_35] : memref<4x2x100xf32, #tpu.memory_space<vmem>>, vector<1x2x100xf32>
      %23 = vector.shape_cast %22 : vector<1x2x100xf32> to vector<2x100xf32>
      %24 = vector.extract_strided_slice %23 {offsets = [0, 0], sizes = [2, 4], strides = [1, 1]} : vector<2x100xf32> to vector<2x4xf32>
      %25 = vector.extract_strided_slice %23 {offsets = [0, 4], sizes = [2, 16], strides = [1, 1]} : vector<2x100xf32> to vector<2x16xf32>
      %26 = vector.extract_strided_slice %23 {offsets = [0, 20], sizes = [2, 16], strides = [1, 1]} : vector<2x100xf32> to vector<2x16xf32>
      %27 = vector.extract_strided_slice %23 {offsets = [0, 36], sizes = [2, 32], strides = [1, 1]} : vector<2x100xf32> to vector<2x32xf32>
      %28 = vector.extract_strided_slice %23 {offsets = [0, 68], sizes = [2, 32], strides = [1, 1]} : vector<2x100xf32> to vector<2x32xf32>
      %cst = arith.constant dense<0.000000e+00> : vector<2x16xf32>
      %29 = tpu.matmul %24, %8, %cst {dimension_numbers = #tpu.dot_dimension_numbers<[1], [0], [0], [1], [0, 0, 1, 1], [], []>} : vector<2x4xf32>, vector<4x16xf32>, vector<2x16xf32> -> vector<2x16xf32>
      %cst_36 = arith.constant 0.000000e+00 : f32
      %30 = vector.broadcast %cst_36 : f32 to vector<2x16xf32>
      %31 = arith.maximumf %29, %30 : vector<2x16xf32>
      %32 = arith.mulf %31, %25 : vector<2x16xf32>
      %cst_37 = arith.constant dense<0.000000e+00> : vector<2x16xf32>
      %33 = tpu.matmul %32, %9, %cst_37 {dimension_numbers = #tpu.dot_dimension_numbers<[1], [0], [0], [1], [0, 0, 1, 1], [], []>} : vector<2x16xf32>, vector<16x16xf32>, vector<2x16xf32> -> vector<2x16xf32>
      %cst_38 = arith.constant 0.000000e+00 : f32
      %34 = vector.broadcast %cst_38 : f32 to vector<2x16xf32>
      %35 = arith.maximumf %33, %34 : vector<2x16xf32>
      %36 = arith.mulf %35, %26 : vector<2x16xf32>
      %c0_39 = arith.constant 0 : index
      %c0_40 = arith.constant 0 : index
      %37 = vector.load %arg24[%c0_39, %c0_40] : memref<2x32xf32, #tpu.memory_space<vmem>>, vector<2x32xf32>
      %c0_41 = arith.constant 0 : index
      %c0_42 = arith.constant 0 : index
      %38 = vector.load %arg18[%c0_41, %c0_42] : memref<2x32xf32, #tpu.memory_space<vmem>>, vector<2x32xf32>
      %39 = tpu.concatenate %36, %37, %38 in 1 : vector<2x16xf32>, vector<2x32xf32>, vector<2x32xf32> -> vector<2x80xf32>
      %cst_43 = arith.constant dense<0.000000e+00> : vector<2x128xf32>
      %40 = tpu.matmul %39, %10, %cst_43 {dimension_numbers = #tpu.dot_dimension_numbers<[1], [0], [0], [1], [0, 0, 1, 1], [], []>} : vector<2x80xf32>, vector<80x128xf32>, vector<2x128xf32> -> vector<2x128xf32>
      %41 = vector.broadcast %11 : vector<1x128xf32> to vector<2x128xf32>
      %42 = arith.addf %40, %41 : vector<2x128xf32>
      %43 = vector.extract_strided_slice %42 {offsets = [0, 0], sizes = [2, 32], strides = [1, 1]} : vector<2x128xf32> to vector<2x32xf32>
      %44 = arith.negf %43 : vector<2x32xf32>
      %45 = math.exp %44 : vector<2x32xf32>
      %cst_44 = arith.constant 1.000000e+00 : f32
      %46 = vector.broadcast %cst_44 : f32 to vector<2x32xf32>
      %47 = arith.addf %46, %45 : vector<2x32xf32>
      %48 = arith.divf %46, %47 : vector<2x32xf32>
      %49 = vector.extract_strided_slice %42 {offsets = [0, 32], sizes = [2, 32], strides = [1, 1]} : vector<2x128xf32> to vector<2x32xf32>
      %50 = arith.negf %49 : vector<2x32xf32>
      %51 = math.exp %50 : vector<2x32xf32>
      %cst_45 = arith.constant 1.000000e+00 : f32
      %52 = vector.broadcast %cst_45 : f32 to vector<2x32xf32>
      %53 = arith.addf %52, %51 : vector<2x32xf32>
      %54 = arith.divf %52, %53 : vector<2x32xf32>
      %55 = vector.extract_strided_slice %42 {offsets = [0, 64], sizes = [2, 32], strides = [1, 1]} : vector<2x128xf32> to vector<2x32xf32>
      %56 = math.tanh %55 : vector<2x32xf32>
      %57 = vector.extract_strided_slice %42 {offsets = [0, 96], sizes = [2, 32], strides = [1, 1]} : vector<2x128xf32> to vector<2x32xf32>
      %58 = arith.negf %57 : vector<2x32xf32>
      %59 = math.exp %58 : vector<2x32xf32>
      %cst_46 = arith.constant 1.000000e+00 : f32
      %60 = vector.broadcast %cst_46 : f32 to vector<2x32xf32>
      %61 = arith.addf %60, %59 : vector<2x32xf32>
      %62 = arith.divf %60, %61 : vector<2x32xf32>
      %c0_47 = arith.constant 0 : index
      %c0_48 = arith.constant 0 : index
      %63 = vector.load %arg19[%c0_47, %c0_48] : memref<2x32xf32, #tpu.memory_space<vmem>>, vector<2x32xf32>
      %64 = arith.mulf %54, %63 : vector<2x32xf32>
      %65 = arith.mulf %48, %56 : vector<2x32xf32>
      %66 = arith.addf %64, %65 : vector<2x32xf32>
      %67 = math.tanh %66 : vector<2x32xf32>
      %68 = arith.mulf %62, %67 : vector<2x32xf32>
      %69 = arith.mulf %68, %27 : vector<2x32xf32>
      %c0_49 = arith.constant 0 : index
      %c0_50 = arith.constant 0 : index
      %70 = vector.load %arg19[%c0_49, %c0_50] : memref<2x32xf32, #tpu.memory_space<vmem>>, vector<2x32xf32>
      tpu.vector_store %arg19[%c0_49, %c0_50], %66 {strides = array<i32>} : memref<2x32xf32, #tpu.memory_space<vmem>>, vector<2x32xf32>,
      %c0_51 = arith.constant 0 : index
      %c0_52 = arith.constant 0 : index
      %71 = vector.load %arg18[%c0_51, %c0_52] : memref<2x32xf32, #tpu.memory_space<vmem>>, vector<2x32xf32>
      tpu.vector_store %arg18[%c0_51, %c0_52], %69 {strides = array<i32>} : memref<2x32xf32, #tpu.memory_space<vmem>>, vector<2x32xf32>,
      %c0_53 = arith.constant 0 : index
      %c0_54 = arith.constant 0 : index
      %72 = vector.load %arg22[%c0_53, %c0_54] : memref<2x16xf32, #tpu.memory_space<vmem>>, vector<2x16xf32>
      %c0_55 = arith.constant 0 : index
      %c0_56 = arith.constant 0 : index
      %73 = vector.load %arg23[%c0_55, %c0_56] : memref<2x16xf32, #tpu.memory_space<vmem>>, vector<2x16xf32>
      %cst_57 = arith.constant 0.000000e+00 : f32
      %74 = vector.broadcast %cst_57 : f32 to vector<2x1xf32>
      %75 = vector.extract_strided_slice %72 {offsets = [0, 0], sizes = [2, 15], strides = [1, 1]} : vector<2x16xf32> to vector<2x15xf32>
      %76 = tpu.concatenate %74, %75 in 1 : vector<2x1xf32>, vector<2x15xf32> -> vector<2x16xf32>
      %77 = vector.extract_strided_slice %72 {offsets = [0, 1], sizes = [2, 15], strides = [1, 1]} : vector<2x16xf32> to vector<2x15xf32>
      %cst_58 = arith.constant 0.000000e+00 : f32
      %78 = vector.broadcast %cst_58 : f32 to vector<2x1xf32>
      %79 = tpu.concatenate %77, %78 in 1 : vector<2x15xf32>, vector<2x1xf32> -> vector<2x16xf32>
      %cst_59 = arith.constant 0.000000e+00 : f32
      %80 = vector.broadcast %cst_59 : f32 to vector<2x1xf32>
      %81 = vector.extract_strided_slice %73 {offsets = [0, 0], sizes = [2, 15], strides = [1, 1]} : vector<2x16xf32> to vector<2x15xf32>
      %82 = tpu.concatenate %80, %81 in 1 : vector<2x1xf32>, vector<2x15xf32> -> vector<2x16xf32>
      %83 = vector.extract_strided_slice %73 {offsets = [0, 1], sizes = [2, 15], strides = [1, 1]} : vector<2x16xf32> to vector<2x15xf32>
      %cst_60 = arith.constant 0.000000e+00 : f32
      %84 = vector.broadcast %cst_60 : f32 to vector<2x1xf32>
      %85 = tpu.concatenate %83, %84 in 1 : vector<2x15xf32>, vector<2x1xf32> -> vector<2x16xf32>
      %86 = vector.shape_cast %76 : vector<2x16xf32> to vector<2x16x1xf32>
      %87 = vector.shape_cast %72 : vector<2x16xf32> to vector<2x16x1xf32>
      %88 = vector.shape_cast %79 : vector<2x16xf32> to vector<2x16x1xf32>
      %89 = vector.shape_cast %82 : vector<2x16xf32> to vector<2x16x1xf32>
      %90 = vector.shape_cast %73 : vector<2x16xf32> to vector<2x16x1xf32>
      %91 = vector.shape_cast %85 : vector<2x16xf32> to vector<2x16x1xf32>
      %92 = tpu.concatenate %86, %87, %88, %89, %90, %91 in 2 : vector<2x16x1xf32>, vector<2x16x1xf32>, vector<2x16x1xf32>, vector<2x16x1xf32>, vector<2x16x1xf32>, vector<2x16x1xf32> -> vector<2x16x6xf32>
      %93 = vector.shape_cast %92 : vector<2x16x6xf32> to vector<32x6xf32>
      %cst_61 = arith.constant dense<0.000000e+00> : vector<32x16xf32>
      %94 = tpu.matmul %93, %13, %cst_61 {dimension_numbers = #tpu.dot_dimension_numbers<[1], [0], [0], [1], [0, 0, 1, 1], [], []>} : vector<32x6xf32>, vector<6x16xf32>, vector<32x16xf32> -> vector<32x16xf32>
      %95 = vector.shape_cast %94 : vector<32x16xf32> to vector<2x16x16xf32>
      %cst_62 = arith.constant dense<0.000000e+00> : vector<2x16xf32>
      %96 = tpu.matmul %69, %12, %cst_62 {dimension_numbers = #tpu.dot_dimension_numbers<[1], [0], [0], [1], [0, 0, 1, 1], [], []>} : vector<2x32xf32>, vector<32x16xf32>, vector<2x16xf32> -> vector<2x16xf32>
      %97 = vector.shape_cast %96 : vector<2x16xf32> to vector<2x1x16xf32>
      %98 = vector.broadcast %97 : vector<2x1x16xf32> to vector<2x16x16xf32>
      %99 = arith.addf %98, %95 : vector<2x16x16xf32>
      %100 = arith.addf %99, %4 : vector<2x16x16xf32>
      %101 = math.tanh %100 : vector<2x16x16xf32>
      %102 = vector.broadcast %7 : vector<1x1x16xf32> to vector<2x16x16xf32>
      %103 = arith.mulf %101, %102 : vector<2x16x16xf32>
      %cst_63 = arith.constant dense<0.000000e+00> : vector<2x16xf32>
      %104 = vector.multi_reduction <add>, %103, %cst_63 [2] : vector<2x16x16xf32> to vector<2x16xf32>
      %105 = arith.addf %104, %5 : vector<2x16xf32>
      %cst_64 = arith.constant dense<0xFF800000> : vector<2xf32>
      %106 = vector.multi_reduction <maximumf>, %105, %cst_64 [1] : vector<2x16xf32> to vector<2xf32>
      %107 = vector.shape_cast %106 : vector<2xf32> to vector<2x1xf32>
      %108 = vector.broadcast %107 : vector<2x1xf32> to vector<2x16xf32>
      %109 = arith.subf %105, %108 : vector<2x16xf32>
      %110 = math.exp %109 : vector<2x16xf32>
      %cst_65 = arith.constant dense<0.000000e+00> : vector<2xf32>
      %111 = vector.multi_reduction <add>, %110, %cst_65 [1] : vector<2x16xf32> to vector<2xf32>
      %112 = vector.shape_cast %111 : vector<2xf32> to vector<2x1xf32>
      %113 = vector.broadcast %112 : vector<2x1xf32> to vector<2x16xf32>
      %114 = arith.divf %110, %113 : vector<2x16xf32>
      %c0_66 = arith.constant 0 : index
      %c0_67 = arith.constant 0 : index
      %115 = vector.load %arg22[%c0_66, %c0_67] : memref<2x16xf32, #tpu.memory_space<vmem>>, vector<2x16xf32>
      tpu.vector_store %arg22[%c0_66, %c0_67], %114 {strides = array<i32>} : memref<2x16xf32, #tpu.memory_space<vmem>>, vector<2x16xf32>,
      %116 = arith.addf %73, %114 : vector<2x16xf32>
      %c0_68 = arith.constant 0 : index
      %c0_69 = arith.constant 0 : index
      %117 = vector.load %arg23[%c0_68, %c0_69] : memref<2x16xf32, #tpu.memory_space<vmem>>, vector<2x16xf32>
      tpu.vector_store %arg23[%c0_68, %c0_69], %116 {strides = array<i32>} : memref<2x16xf32, #tpu.memory_space<vmem>>, vector<2x16xf32>,
      %118 = vector.shape_cast %114 : vector<2x16xf32> to vector<2x1x16xf32>
      "tpu.trace_start"() <{level = 10 : i32, message = "bqt,bte->bqe"}> : () -> ()
      %cst_70 = arith.constant dense<0.000000e+00> : vector<2x1x32xf32>
      %119 = tpu.matmul %118, %3, %cst_70 {dimension_numbers = #tpu.dot_dimension_numbers<[2], [1], [1], [2], [0, 0, 0, 1, 1, 2], [0], [0]>} : vector<2x1x16xf32>, vector<2x16x32xf32>, vector<2x1x32xf32> -> vector<2x1x32xf32>
      "tpu.trace_stop"() : () -> ()
      %120 = vector.shape_cast %119 : vector<2x1x32xf32> to vector<2x32xf32>
      %c0_71 = arith.constant 0 : index
      %c0_72 = arith.constant 0 : index
      %121 = vector.load %arg24[%c0_71, %c0_72] : memref<2x32xf32, #tpu.memory_space<vmem>>, vector<2x32xf32>
      tpu.vector_store %arg24[%c0_71, %c0_72], %120 {strides = array<i32>} : memref<2x32xf32, #tpu.memory_space<vmem>>, vector<2x32xf32>,
      %c0_73 = arith.constant 0 : index
      %c0_74 = arith.constant 0 : index
      %122 = vector.load %arg20[%c0_73, %c0_74] : memref<2x32xf32, #tpu.memory_space<vmem>>, vector<2x32xf32>
      %123 = tpu.concatenate %69, %120, %122 in 1 : vector<2x32xf32>, vector<2x32xf32>, vector<2x32xf32> -> vector<2x96xf32>
      %cst_75 = arith.constant dense<0.000000e+00> : vector<2x128xf32>
      %124 = tpu.matmul %123, %14, %cst_75 {dimension_numbers = #tpu.dot_dimension_numbers<[1], [0], [0], [1], [0, 0, 1, 1], [], []>} : vector<2x96xf32>, vector<96x128xf32>, vector<2x128xf32> -> vector<2x128xf32>
      %125 = vector.broadcast %15 : vector<1x128xf32> to vector<2x128xf32>
      %126 = arith.addf %124, %125 : vector<2x128xf32>
      %127 = vector.extract_strided_slice %126 {offsets = [0, 0], sizes = [2, 32], strides = [1, 1]} : vector<2x128xf32> to vector<2x32xf32>
      %128 = arith.negf %127 : vector<2x32xf32>
      %129 = math.exp %128 : vector<2x32xf32>
      %cst_76 = arith.constant 1.000000e+00 : f32
      %130 = vector.broadcast %cst_76 : f32 to vector<2x32xf32>
      %131 = arith.addf %130, %129 : vector<2x32xf32>
      %132 = arith.divf %130, %131 : vector<2x32xf32>
      %133 = vector.extract_strided_slice %126 {offsets = [0, 32], sizes = [2, 32], strides = [1, 1]} : vector<2x128xf32> to vector<2x32xf32>
      %134 = arith.negf %133 : vector<2x32xf32>
      %135 = math.exp %134 : vector<2x32xf32>
      %cst_77 = arith.constant 1.000000e+00 : f32
      %136 = vector.broadcast %cst_77 : f32 to vector<2x32xf32>
      %137 = arith.addf %136, %135 : vector<2x32xf32>
      %138 = arith.divf %136, %137 : vector<2x32xf32>
      %139 = vector.extract_strided_slice %126 {offsets = [0, 64], sizes = [2, 32], strides = [1, 1]} : vector<2x128xf32> to vector<2x32xf32>
      %140 = math.tanh %139 : vector<2x32xf32>
      %141 = vector.extract_strided_slice %126 {offsets = [0, 96], sizes = [2, 32], strides = [1, 1]} : vector<2x128xf32> to vector<2x32xf32>
      %142 = arith.negf %141 : vector<2x32xf32>
      %143 = math.exp %142 : vector<2x32xf32>
      %cst_78 = arith.constant 1.000000e+00 : f32
      %144 = vector.broadcast %cst_78 : f32 to vector<2x32xf32>
      %145 = arith.addf %144, %143 : vector<2x32xf32>
      %146 = arith.divf %144, %145 : vector<2x32xf32>
      %c0_79 = arith.constant 0 : index
      %c0_80 = arith.constant 0 : index
      %147 = vector.load %arg21[%c0_79, %c0_80] : memref<2x32xf32, #tpu.memory_space<vmem>>, vector<2x32xf32>
      %148 = arith.mulf %138, %147 : vector<2x32xf32>
      %149 = arith.mulf %132, %140 : vector<2x32xf32>
      %150 = arith.addf %148, %149 : vector<2x32xf32>
      %151 = math.tanh %150 : vector<2x32xf32>
      %152 = arith.mulf %146, %151 : vector<2x32xf32>
      %153 = arith.mulf %152, %28 : vector<2x32xf32>
      %c0_81 = arith.constant 0 : index
      %c0_82 = arith.constant 0 : index
      %154 = vector.load %arg21[%c0_81, %c0_82] : memref<2x32xf32, #tpu.memory_space<vmem>>, vector<2x32xf32>
      tpu.vector_store %arg21[%c0_81, %c0_82], %150 {strides = array<i32>} : memref<2x32xf32, #tpu.memory_space<vmem>>, vector<2x32xf32>,
      %c0_83 = arith.constant 0 : index
      %c0_84 = arith.constant 0 : index
      %155 = vector.load %arg20[%c0_83, %c0_84] : memref<2x32xf32, #tpu.memory_space<vmem>>, vector<2x32xf32>
      tpu.vector_store %arg20[%c0_83, %c0_84], %153 {strides = array<i32>} : memref<2x32xf32, #tpu.memory_space<vmem>>, vector<2x32xf32>,
      %156 = tpu.concatenate %153, %120 in 1 : vector<2x32xf32>, vector<2x32xf32> -> vector<2x64xf32>
      %cst_85 = arith.constant dense<0.000000e+00> : vector<2x5xf32>
      %157 = tpu.matmul %156, %16, %cst_85 {dimension_numbers = #tpu.dot_dimension_numbers<[1], [0], [0], [1], [0, 0, 1, 1], [], []>} : vector<2x64xf32>, vector<64x5xf32>, vector<2x5xf32> -> vector<2x5xf32>
      %158 = vector.broadcast %17 : vector<1x5xf32> to vector<2x5xf32>
      %159 = arith.addf %157, %158 : vector<2x5xf32>
      %160 = arith.index_cast %20 : i32 to index
      %c0_86 = arith.constant 0 : index
      %c0_87 = arith.constant 0 : index
      %161 = vector.load %arg16[%160, %c0_86, %c0_87] : memref<4x2x5xf32, #tpu.memory_space<vmem>>, vector<1x2x5xf32>
      %162 = vector.shape_cast %161 : vector<1x2x5xf32> to vector<2x5xf32>
      %163 = vector.shape_cast %159 : vector<2x5xf32> to vector<1x2x5xf32>
      tpu.vector_store %arg16[%160, %c0_86, %c0_87], %163 {strides = array<i32>} : memref<4x2x5xf32, #tpu.memory_space<vmem>>, vector<1x2x5xf32>,
      %164 = arith.index_cast %20 : i32 to index
      %c0_88 = arith.constant 0 : index
      %c0_89 = arith.constant 0 : index
      %165 = vector.load %arg17[%164, %c0_88, %c0_89] : memref<4x2x16xf32, #tpu.memory_space<vmem>>, vector<1x2x16xf32>
      %166 = vector.shape_cast %165 : vector<1x2x16xf32> to vector<2x16xf32>
      %167 = vector.shape_cast %114 : vector<2x16xf32> to vector<1x2x16xf32>
      tpu.vector_store %arg17[%164, %c0_88, %c0_89], %167 {strides = array<i32>} : memref<4x2x16xf32, #tpu.memory_space<vmem>>, vector<1x2x16xf32>,
    }
    %c4_i32_31 = arith.constant 4 : i32
    return
  }
  func.func @transform_0(%arg0: i32) -> (i32, i32, i32) {
    %c0_i32 = arith.constant 0 : i32
    %c0_i32_0 = arith.constant 0 : i32
    %c0_i32_1 = arith.constant 0 : i32
    return %arg0, %c0_i32, %c0_i32_0 : i32, i32, i32
  }
  func.func @transform_1(%arg0: i32) -> (i32, i32, i32) {
    %c0_i32 = arith.constant 0 : i32
    %c0_i32_0 = arith.constant 0 : i32
    %c0_i32_1 = arith.constant 0 : i32
    %c0_i32_2 = arith.constant 0 : i32
    return %c0_i32, %c0_i32_0, %c0_i32_1 : i32, i32, i32
  }
  func.func @transform_2(%arg0: i32) -> (i32, i32, i32) {
    %c0_i32 = arith.constant 0 : i32
    %c0_i32_0 = arith.constant 0 : i32
    %c0_i32_1 = arith.constant 0 : i32
    %c0_i32_2 = arith.constant 0 : i32
    return %c0_i32, %c0_i32_0, %c0_i32_1 : i32, i32, i32
  }
  func.func @transform_3(%arg0: i32) -> (i32, i32) {
    %c0_i32 = arith.constant 0 : i32
    %c0_i32_0 = arith.constant 0 : i32
    %c0_i32_1 = arith.constant 0 : i32
    return %c0_i32, %c0_i32_0 : i32, i32
  }
  func.func @transform_4(%arg0: i32) -> (i32, i32) {
    %c0_i32 = arith.constant 0 : i32
    %c0_i32_0 = arith.constant 0 : i32
    %c0_i32_1 = arith.constant 0 : i32
    return %c0_i32, %c0_i32_0 : i32, i32
  }
  func.func @transform_5(%arg0: i32) -> (i32, i32) {
    %c0_i32 = arith.constant 0 : i32
    %c0_i32_0 = arith.constant 0 : i32
    %c0_i32_1 = arith.constant 0 : i32
    return %c0_i32, %c0_i32_0 : i32, i32
  }
  func.func @transform_6(%arg0: i32) -> (i32, i32) {
    %c0_i32 = arith.constant 0 : i32
    %c0_i32_0 = arith.constant 0 : i32
    %c0_i32_1 = arith.constant 0 : i32
    return %c0_i32, %c0_i32_0 : i32, i32
  }
  func.func @transform_7(%arg0: i32) -> (i32, i32) {
    %c0_i32 = arith.constant 0 : i32
    %c0_i32_0 = arith.constant 0 : i32
    %c0_i32_1 = arith.constant 0 : i32
    return %c0_i32, %c0_i32_0 : i32, i32
  }
  func.func @transform_8(%arg0: i32) -> (i32, i32) {
    %c0_i32 = arith.constant 0 : i32
    %c0_i32_0 = arith.constant 0 : i32
    %c0_i32_1 = arith.constant 0 : i32
    return %c0_i32, %c0_i32_0 : i32, i32
  }
  func.func @transform_9(%arg0: i32) -> (i32, i32) {
    %c0_i32 = arith.constant 0 : i32
    %c0_i32_0 = arith.constant 0 : i32
    %c0_i32_1 = arith.constant 0 : i32
    return %c0_i32, %c0_i32_0 : i32, i32
  }
  func.func @transform_10(%arg0: i32) -> (i32, i32) {
    %c0_i32 = arith.constant 0 : i32
    %c0_i32_0 = arith.constant 0 : i32
    %c0_i32_1 = arith.constant 0 : i32
    return %c0_i32, %c0_i32_0 : i32, i32
  }
  func.func @transform_11(%arg0: i32) -> (i32, i32) {
    %c0_i32 = arith.constant 0 : i32
    %c0_i32_0 = arith.constant 0 : i32
    %c0_i32_1 = arith.constant 0 : i32
    return %c0_i32, %c0_i32_0 : i32, i32
  }
  func.func @transform_12(%arg0: i32) -> (i32, i32) {
    %c0_i32 = arith.constant 0 : i32
    %c0_i32_0 = arith.constant 0 : i32
    %c0_i32_1 = arith.constant 0 : i32
    return %c0_i32, %c0_i32_0 : i32, i32
  }
  func.func @transform_13(%arg0: i32) -> (i32, i32) {
    %c0_i32 = arith.constant 0 : i32
    %c0_i32_0 = arith.constant 0 : i32
    %c0_i32_1 = arith.constant 0 : i32
    return %c0_i32, %c0_i32_0 : i32, i32
  }
  func.func @transform_14(%arg0: i32) -> (i32, i32) {
    %c0_i32 = arith.constant 0 : i32
    %c0_i32_0 = arith.constant 0 : i32
    %c0_i32_1 = arith.constant 0 : i32
    return %c0_i32, %c0_i32_0 : i32, i32
  }
  func.func @transform_15(%arg0: i32) -> (i32, i32, i32) {
    %c0_i32 = arith.constant 0 : i32
    %c0_i32_0 = arith.constant 0 : i32
    %c0_i32_1 = arith.constant 0 : i32
    return %arg0, %c0_i32, %c0_i32_0 : i32, i32, i32
  }
  func.func @transform_16(%arg0: i32) -> (i32, i32, i32) {
    %c0_i32 = arith.constant 0 : i32
    %c0_i32_0 = arith.constant 0 : i32
    %c0_i32_1 = arith.constant 0 : i32
    return %arg0, %c0_i32, %c0_i32_0 : i32, i32, i32
  }
}

</mosaic_0001>

<bundles_post_ra>
// kernel: tpu_custom_call.1
= control target key start
LH: loop header
LB: loop body
LE: loop exit
PB: predicated region body
PF: predicated region fallthrough
CT: control target
= control target key end

     0   :  { %s3781_s0 = inlined_call_operand.hbm [shape: f32[8,2,100], index: 0, kind: input, shape index: {}]   ;;  %s3782_s1 = inlined_call_operand.vmem [shape: f32[2,16,32], index: 1, kind: input, shape index: {}]   ;;  %s3783_s2 = inlined_call_operand.hbm [shape: f32[2,16,16], index: 2, kind: input, shape index: {}]   ;;  %s3784_s3 = inlined_call_operand.hbm [shape: f32[2,16], index: 3, kind: input, shape index: {}]   ;;  %s3785_s4 = inlined_call_operand.vmem [shape: f32[4,16], index: 4, kind: input, shape index: {}]   ;;  %s3786_s5 = inlined_call_operand.hbm [shape: f32[16,16], index: 5, kind: input, shape index: {}]   ;;  %s3787_s6 = inlined_call_operand.hbm [shape: f32[80,128], index: 6, kind: input, shape index: {}]   ;;  %s3788_s7 = inlined_call_operand.vmem [shape: f32[1,128], index: 7, kind: input, shape index: {}]   ;;  %s3789_s8 = inlined_call_operand.vmem [shape: f32[32,16], index: 8, kind: input, shape index: {}]   ;;  %s3790_s9 = inlined_call_operand.hbm [shape: f32[1,16], index: 9, kind: input, shape index: {}]   ;;  %s3791_s10 = inlined_call_operand.hbm [shape: f32[6,16], index: 10, kind: input, shape index: {}]   ;;  %s3792_s11 = inlined_call_operand.vmem [shape: f32[96,128], index: 11, kind: input, shape index: {}]   ;;  %s3793_s12 = inlined_call_operand.hbm [shape: f32[1,128], index: 12, kind: input, shape index: {}]   ;;  %s3794_s13 = inlined_call_operand.vmem [shape: f32[64,5], index: 13, kind: input, shape index: {}]   ;;  %s3795_s14 = inlined_call_operand.vmem [shape: f32[1,5], index: 14, kind: input, shape index: {}]   ;;  %s3796_s15 = inlined_call_operand.vmem [shape: f32[8,2,5], index: 15, kind: output, shape index: {0}]   ;;  %s3797_s16 = inlined_call_operand.hbm [shape: f32[8,2,16], index: 16, kind: output, shape index: {1}]  }
   0x1   :  { %3810 = sst [smem:[#allocation48_spill]] %s3781_s0 }
   0x2   :  { %3811 = sst [smem:[#allocation49_spill]] %s3783_s2 }
   0x3   :  { %3812 = sst [smem:[#allocation50_spill]] %s3784_s3 }
   0x4   :  { %3813 = sst [smem:[#allocation51_spill]] %s3786_s5 }
   0x5   :  { %3814 = sst [smem:[#allocation52_spill]] %s3787_s6 }
   0x6   :  { %3815 = sst [smem:[#allocation53_spill]] %s3790_s9 }
   0x7   :  { %3816 = sst [smem:[#allocation54_spill]] %s3791_s10 }
   0x8   :  { %3817 = sst [smem:[#allocation55_spill]] %s3793_s12 }
   0x9   :  { %3818 = sst [smem:[#allocation56_spill]] %s3795_s14 }
   0xa   :  { %3819 = sst [smem:[#allocation57_spill]] %s3797_s16 }
   0xb   :  { %22 = vsyncpa [#allocation10], 0 }
   0xc   :  { %24 = vsyncpa [#allocation10 + $0x1], 0 }
   0xd   :  { %25 = vsyncpa [#allocation13], 0 }
   0xe   :  { %26 = vsyncpa [#allocation16], 0 }
   0xf   :  { %27 = vsyncpa [#allocation19], 0 }
  0x10   :  { %28 = vsyncpa [#allocation22], 0 }
  0x11   :  { %29 = vsyncpa [#allocation11], 0 }
  0x12   :  { %31 = vsyncpa [#allocation11 + $0x1], 0  ;;  %s3026_s21 = smov 0   ;;  %s3028_s22 = smov 0  }
  0x13   :  { %s3030_s23 = smov 0   ;;  %s3032_s24 = smov 0  }
  0x14 LB: > { %s2910_s25 = smov [#allocation12]   ;;  %s3047_s27 = sadd.s32 4294967295, %s2904_s24   ;;  %s2904_s24 = sphi %s3032_s24, %s3895_s24   ;;  %s2900_s23 = sphi %s3030_s23, %s3894_s23   ;;  %s2896_s22 = sphi %s3028_s22, %s3893_s22   ;;  %s2892_s21 = sphi %s3026_s21, %s3892_s21  }
  0x15   : > { %s429_s26 = sshll.u32 %s2910_s25, 4  ;;  %p2204_p0 = scmp.ge.s32.totalorder %s2904_s24, 1  ;;  %s430_s26 = int_to_ptr.vmem [resolvable:$true] %s429_s26 }
  0x16   : > { %p3802_p1 = scmp.eq.s32.totalorder %s3047_s27, 0  ;;  %p414_p2 = scmp.lt.s32.totalorder %s2904_s24, 3 }
  0x17   : > { %s2911_s29 = smov [#allocation15]   ;;  %s2912_s17 = smov [#allocation18]  }
  0x18   : > { %p3053_p4 = pnand %p2204_p0, %p414_p2  ;;  %s456_s30 = sshll.u32 %s2911_s29, 4  ;;  %s3066_s30 = int_to_ptr.vmem [resolvable:$true] %s456_s30 }
  0x19   : > { %s489_s18 = sshll.u32 %s2912_s17, 4  ;;  %s2621_s20 = scalar_lea.vmem %s430_s26, 512  ;;  %s3068_s18 = int_to_ptr.vmem [resolvable:$true] %s489_s18 }
  0x1a   : > { %s3820_s28 = scalar_select %p3053_p4, 1, 0 }
  0x1b   : > { %p2457_p6 = pneg %p3053_p4  ;;  %p2622_p9 = scmp.ne.s32.totalorder %s430_s26, %s2621_s20 }
  0x1c   : > { %p2629_p12 = scmp.lt.s32.totalorder %s430_s26, %s430_s26  ;;  %p2630_p13 = scmp.lt.s32.totalorder %s2621_s20, %s2621_s20 }
  0x1d   : > { %p3062_p7 = pnand %p2457_p6, %p3802_p1 }
  0x1e   : > { %p2631_p0 = por %p2630_p13, %p2629_p12 }
  0x1f   : > { %p3072_p8 = pneg %p3062_p7 }
  0x21   : > { %p2624_p10 = pnand %p2622_p9, %p3072_p8 }
  0x23   : > { %p2625_p11 = pneg %p2624_p10 }
  0x25   : > { %p2632_p2 = pnand %p2631_p0, %p2625_p11 }
  0x27   : > { %2635 = shalt.err (!%p2632_p2)
}
  0x28   : > { %s3800_s25 = smov 128   ;;  %s3801_s29 = smov 8  }
  0x29   : > { %s3823_s2 = sld [smem:[#allocation49_spill]]  ;;  %s2647_s14 = scalar_lea.vmem %s3066_s30, 256 }
  0x2a   : > { %p2648_p6 = scmp.ne.s32.totalorder %s3066_s30, %s2647_s14  ;;  %p2655_p11 = scmp.lt.s32.totalorder %s3066_s30, %s3066_s30 }
  0x2b   : > { %p2656_p12 = scmp.lt.s32.totalorder %s2647_s14, %s2647_s14 }
  0x2c   : > { %p2650_p9 = pnand %p2648_p6, %p3072_p8 }
  0x2d   : > { %p2657_p13 = por %p2656_p12, %p2655_p11 }
  0x2e   : > { %p2651_p10 = pneg %p2650_p9 }
  0x2f   : > { %2460 = dma.hbm_to_vmem [thread:$0]  (!%p3062_p7), %s3823_s2, 512, %s430_s26, [#allocation13], %s3800_s25, %s3800_s25, %s3801_s29  }
  0x30   : > { %p2658_p0 = pnand %p2657_p13, %p2651_p10 }
  0x32   : > { %2661 = shalt.err (!%p2658_p0)
}
  0x33   : > { %s3824_s5 = sld [smem:[#allocation51_spill]]  ;;  %s2673_s26 = scalar_lea.vmem %s3068_s18, 16 }
  0x34   : > { %p2674_p2 = scmp.ne.s32.totalorder %s3068_s18, %s2673_s26  ;;  %s2680_s14 = scalar_lea.vmem %s3068_s18, 32 }
  0x35   : > { %p2681_p10 = scmp.lt.s32.totalorder %s3068_s18, %s3068_s18  ;;  %p2682_p11 = scmp.lt.s32.totalorder %s2680_s14, %s2673_s26 }
  0x36   : > { %p2676_p6 = pnand %p2674_p2, %p3072_p8 }
  0x37   : > { %p2683_p12 = por %p2682_p11, %p2681_p10 }
  0x38   : > { %p2677_p9 = pneg %p2676_p6 }
  0x39   : > { %2466 = dma.hbm_to_vmem [thread:$0]  (!%p3062_p7), %s3824_s5, 256, %s3066_s30, [#allocation16], %s3800_s25, %s3800_s25, %s3801_s29  }
  0x3a   : > { %p2684_p13 = pnand %p2683_p12, %p2677_p9 }
  0x3c   : > { %2687 = shalt.err (!%p2684_p13)
}
  0x3d   : > { %s3825_s9 = sld [smem:[#allocation53_spill]]  ;;  %s2915_s30 = smov [#allocation14]  }
  0x3e   : > { %s443_s16 = sshll.u32 %s2915_s30, 4  ;;  %s2916_s25 = smov [#allocation17]   ;;  %s444_s16 = int_to_ptr.vmem [resolvable:$true] %s443_s16 }
  0x3f   : > { %s469_s29 = sshll.u32 %s2916_s25, 4  ;;  %s2699_s2 = scalar_lea.vmem %s444_s16, 32  ;;  %s470_s29 = int_to_ptr.vmem [resolvable:$true] %s469_s29 }
  0x40   : > { %p2700_p0 = scmp.ne.s32.totalorder %s444_s16, %s2699_s2  ;;  %p2707_p9 = scmp.lt.s32.totalorder %s444_s16, %s444_s16 }
  0x41   : > { %p2708_p10 = scmp.lt.s32.totalorder %s2699_s2, %s2699_s2 }
  0x42   : > { %p2702_p2 = pnand %p2700_p0, %p3072_p8 }
  0x43   : > { %2472 = dma.hbm_to_vmem [thread:$0]  (!%p3062_p7), %s3825_s9, 16, %s3068_s18, [#allocation19]  }
  0x44   : > { %p2703_p6 = pneg %p2702_p2  ;;  %p2709_p11 = por %p2708_p10, %p2707_p9 }
  0x46   : > { %p2710_p12 = pnand %p2709_p11, %p2703_p6 }
  0x48   : > { %2713 = shalt.err (!%p2710_p12)
}
  0x49   : > { %s3826_s3 = sld [smem:[#allocation50_spill]]  ;;  %s2725_s18 = scalar_lea.vmem %s470_s29, 1280 }
  0x4a   : > { %p2726_p13 = scmp.ne.s32.totalorder %s470_s29, %s2725_s18  ;;  %p2733_p0 = scmp.lt.s32.totalorder %s470_s29, %s470_s29 }
  0x4b   : > { %p2734_p2 = scmp.lt.s32.totalorder %s2725_s18, %s2725_s18 }
  0x4c   : > { %p2728_p5 = pnand %p2726_p13, %p3072_p8 }
  0x4d   : > { %p2735_p1 = por %p2734_p2, %p2733_p0 }
  0x4e   : > { %p2729_p3 = pneg %p2728_p5 }
  0x4f   : > { %2463 = dma.hbm_to_vmem [thread:$0]  (!%p3062_p7), %s3826_s3, 32, %s444_s16, [#allocation13]  }
  0x50   : > { %p2736_p4 = pnand %p2735_p1, %p2729_p3 }
  0x52   : > { %2739 = shalt.err (!%p2736_p4)
}
  0x53   : > { %s3827_s2 = smov 8   ;;  %s3828_s25 = smov 128  }
  0x54   : > { %s3829_s6 = sld [smem:[#allocation52_spill]]  ;;  %s2917_s30 = smov [#allocation20]  }
  0x55   : > { %s500_s16 = sshll.u32 %s2917_s30, 4  ;;  %s2918_s26 = smov [#allocation21]   ;;  %s501_s16 = int_to_ptr.vmem [resolvable:$true] %s500_s16 }
  0x56   : > { %s514_s14 = sshll.u32 %s2918_s26, 4  ;;  %s2751_s3 = scalar_lea.vmem %s501_s16, 128  ;;  %s515_s14 = int_to_ptr.vmem [resolvable:$true] %s514_s14 }
  0x57   : > { %p2752_p5 = scmp.ne.s32.totalorder %s501_s16, %s2751_s3  ;;  %p2759_p4 = scmp.lt.s32.totalorder %s501_s16, %s501_s16 }
  0x58   : > { %p2760_p6 = scmp.lt.s32.totalorder %s2751_s3, %s2751_s3 }
  0x59   : > { %p2754_p1 = pnand %p2752_p5, %p3072_p8 }
  0x5a   : > { %2469 = dma.hbm_to_vmem [thread:$0]  (!%p3062_p7), %s3829_s6, 1280, %s470_s29, [#allocation16], %s3828_s25, %s3828_s25, %s3827_s2  }
  0x5b   : > { %p2755_p3 = pneg %p2754_p1  ;;  %p2761_p9 = por %p2760_p6, %p2759_p4 }
  0x5d   : > { %p2762_p10 = pnand %p2761_p9, %p2755_p3 }
  0x5f   : > { %2765 = shalt.err (!%p2762_p10)
}
  0x60   : > { %s3830_s10 = sld [smem:[#allocation54_spill]]  ;;  %s2777_s29 = scalar_lea.vmem %s515_s14, 16 }
  0x61   : > { %p2778_p11 = scmp.ne.s32.totalorder %s515_s14, %s2777_s29  ;;  %s2784_s2 = scalar_lea.vmem %s515_s14, 32 }
  0x62   : > { %p2785_p0 = scmp.lt.s32.totalorder %s515_s14, %s515_s14  ;;  %p2786_p2 = scmp.lt.s32.totalorder %s2784_s2, %s2777_s29 }
  0x63   : > { %p2780_p12 = pnand %p2778_p11, %p3072_p8 }
  0x64   : > { %p2787_p5 = por %p2786_p2, %p2785_p0 }
  0x65   : > { %p2781_p13 = pneg %p2780_p12 }
  0x66   : > { %2475 = dma.hbm_to_vmem [thread:$0]  (!%p3062_p7), %s3830_s10, 128, %s501_s16, [#allocation19]  }
  0x67   : > { %p2788_p1 = pnand %p2787_p5, %p2781_p13 }
  0x69   : > { %2791 = shalt.err (!%p2788_p1)
}
  0x6a   : > { %s3831_s12 = sld [smem:[#allocation55_spill]]  ;;  %s2203_s19 = sadd.s32 4294967294, %s2904_s24  }
  0x6b   : > { %s3147_s0 = sadd.s32 1, %s2904_s24   ;;  %s44_s20 = sadd.s32 1, %s2900_s23 }
  0x6c   : > { %s41_s30 = ssub.s32 %s2904_s24, %s3147_s0  ;;  %p51_p8 = scmp.ne.s32.totalorder %s2900_s23, %s2896_s22 }
  0x6d   : > { %p42_p3 = scmp.eq.s32.totalorder %s41_s30, 0  ;;  %p52_p4 = scmp.eq.s32.totalorder %s2904_s24, 0 }
  0x6e   : > { %p57_p6 = scmp.ne.s32.totalorder %s2896_s22, %s2892_s21  ;;  %p401_p9 = scmp.eq.s32.totalorder %s3047_s27, 1 }
  0x6f   : > { %s3159_s16 = scalar_select %p42_p3, %s2900_s23, %s44_s20  }
  0x70   : > { %2478 = dma.hbm_to_vmem [thread:$0]  (!%p3062_p7), %s3831_s12, 16, %s515_s14, [#allocation22]  }
  0x71   : > { %3832 = sst [smem:[#allocation30_spill]] %s3159_s16  ;;  %p53_p10 = por %p52_p4, %p51_p8 }
  0x72   : > { %p3833_p11 = scmp.eq.s32.totalorder %s3047_s27, 0  ;;  %p3167_p7 = por %p401_p9, %p51_p8 }
  0x73   : > { %p407_p13 = scmp.eq.s32.totalorder %s2203_s19, 1  ;;  %p2494_p0 = scmp.lt.s32.totalorder %s2904_s24, 2 }
  0x74   : > { %p3163_p12 = por %p3833_p11, %p57_p6  ;;  %s531_s18 = sand.u32 1, %s2900_s23  }
  0x75   : > { %s3835_s14 = scalar_select %p3167_p7, 1, 0 }
  0x76   : > { %s3834_s26 = scalar_select %p3163_p12, 1, 0 }
  0x77   : > { %p3173_p2 = por %p407_p13, %p57_p6  ;;  %s2213_s29 = sshll.u32 %s531_s18, 3 }
  0x78   : > { %s2255_s2 = sshll.u32 %s2904_s24, 7  ;;  %s3837_s20 = sld [smem:[#allocation48_spill]] }
  0x79   : > { %s3836_s17 = scalar_select %p3173_p2, 1, 0 }
  0x7a   : > { %s535_s5 = scalar_lea.vmem [#allocation9], %s2213_s29  ;;  %p3183_p5 = pnand %p2494_p0, %p53_p10 }
  0x7b   : > { %s542_s6 = sshll.u32 %s535_s5, 4  ;;  %s3189_s9 = scalar_lea.sflag [#allocation10], %s531_s18  ;;  %s3187_s6 = int_to_ptr.vmem [resolvable:$true] %s542_s6 }
  0x7c   : > { %p2794_p8 = pneg %p3183_p5 }
  0x7e   : > { %s3181_s30 = scalar_lea.hbm %s3837_s20, %s2255_s2  ;;  %s2797_s29 = scalar_lea.hbm %s3837_s20, 256 }
  0x7f   : > { %s2792_s10 = scalar_lea.hbm %s3181_s30, 128  ;;  %p2798_p6 = scmp.lt.s32.totalorder %s3181_s30, %s3837_s20 }
  0x80   : > { %p2793_p1 = scmp.ne.s32.totalorder %s3181_s30, %s2792_s10  ;;  %p2799_p9 = scmp.lt.s32.totalorder %s2797_s29, %s2792_s10 }
  0x82   : > { %p2795_p3 = pnand %p2794_p8, %p2793_p1  ;;  %p2800_p10 = por %p2799_p9, %p2798_p6 }
  0x84   : > { %p2796_p4 = pneg %p2795_p3 }
  0x86   : > { %p2801_p11 = pnand %p2800_p10, %p2796_p4 }
  0x88   : > { %2804 = shalt.err (!%p2801_p11)
}
  0x89   : > { %s2805_s18 = scalar_lea.vmem %s3187_s6, 128  ;;  %s2919_s12 = smov [#allocation9]  }
  0x8a   : > { %p2806_p13 = scmp.ne.s32.totalorder %s3187_s6, %s2805_s18  ;;  %s2810_s16 = sshll.u32 %s2919_s12, 4  ;;  %s2811_s16 = int_to_ptr.vmem [resolvable:$false] %s2810_s16 }
  0x8b   : > { %s2812_s2 = scalar_lea.vmem %s2811_s16, 256  ;;  %p2813_p3 = scmp.lt.s32.totalorder %s3187_s6, %s2811_s16 }
  0x8c   : > { %p2808_p0 = pnand %p2806_p13, %p2794_p8  ;;  %p2814_p2 = scmp.lt.s32.totalorder %s2812_s2, %s2805_s18 }
  0x8e   : > { %p2809_p1 = pneg %p2808_p0  ;;  %p2815_p7 = por %p2814_p2, %p2813_p3 }
  0x90   : > { %p2816_p12 = pnand %p2815_p7, %p2809_p1 }
  0x92   : > { %2819 = shalt.err (!%p2816_p12)
}
  0x93   : > { %s2920_s10 = smov 32   ;;  %s2921_s3 = smov 2  }
  0x94   : > { %2482 = dma.hbm_to_vmem [thread:$0]  (!%p3183_p5), %s3181_s30, 128, %s3187_s6, %s3189_s9, %s2920_s10, %s2920_s10, %s2921_s3  }
  0x95   : > { %p3839_p8 = scmp.ne.s32.totalorder %s3820_s28, 0 }
  0x97   : > { %554 = sbr.rel (%p3839_p8) target bundleno = 3610 (0xe1a), region = 80 }
  0x9c   : > { %s3213_s12 = sand.u32 1, %s2896_s22   ;;  %p3840_p12 = scmp.ne.s32.totalorder %s3834_s26, 0 }
  0x9d   : > { %s2217_s16 = sshll.u32 %s3213_s12, 3  ;;  %s557_s29 = scalar_lea.sflag [#allocation10], %s3213_s12 }
  0x9e   : > { %s3217_s5 = scalar_lea.vmem [#allocation9], %s2217_s16 }
  0x9f   : > { %2867 = dma.done.wait (%p3840_p12), %s557_s29, 128  }
  0xa0   : > { %2869 = vsyncadd (%p3840_p12), %s557_s29, 4294967168  ;;  %p3841_p7 = scmp.eq.s32.totalorder %s3047_s27, 0 }
  0xa2   : > { %2871 = dma.done.wait (%p3841_p7), [#allocation13], 544   ;;  %p3842_p2 = pmov %p3841_p7 }
  0xa4   : > { %2873 = vsyncadd (%p3842_p2), [#allocation13], 4294966752  ;;  %p3843_p5 = pmov %p3842_p2 }
  0xa5   : > { %p3844_p4 = pmov %p3842_p2 }
  0xa6   : > { %2875 = dma.done.wait (%p3843_p5), [#allocation16], 1536  }
  0xa7   : > { %2877 = vsyncadd (%p3844_p4), [#allocation16], 4294965760  ;;  %p3845_p6 = pmov %p3842_p2 }
  0xa8   : > { %p3846_p9 = pmov %p3842_p2 }
  0xa9   : > { %2879 = dma.done.wait (%p3845_p6), [#allocation19], 144  }
  0xaa   : > { %2881 = vsyncadd (%p3846_p9), [#allocation19], 4294967152  ;;  %p3847_p10 = pmov %p3842_p2 }
  0xab   : > { %p3848_p11 = pmov %p3842_p2 }
  0xac   : > { %2883 = dma.done.wait (%p3847_p10), [#allocation22], 16  }
  0xad   : > { %2885 = vsyncadd (%p3848_p11), [#allocation22], 4294967280  ;;  %s2226_s6 = sshll.u32 %s3047_s27, 2  ;;  %s3245_s19 = scalar_lea.vmem [#allocation23], %s2217_s16 }
  0xae   : > { %p644_p13 = scmp.lt.s32.totalorder %s2226_s6, 7  ;;  %p3849_p0 = scmp.ne.s32.totalorder %s3047_s27, 0 }
  0xb0   : > { %s3897_s6 = smov (!%p644_p13, %s2226_s6), 7  ;;  %653 = sbr.rel (%p3849_p0) target bundleno = 186 (0xba), region = 116 }
  0xb1   : > { %s2227_s9 = sshll.u32 %s3897_s6, 1 }
  0xb2   : > { %s3243_s30 = scalar_lea.vmem %s3796_s15, %s2227_s9 }
  0xb5   : > { %vm654_vm0 = vcmask 254976   ;;  %vm659_vm1 = vcmask 123904   ;;  %v2922_v0 = vmov 0.0  }
  0xb6   : > { %655 = vst.msk [vmem:[#allocation2] sm:$0x3] %vm654_vm0, %v2922_v0  ;;  %656 = vst.msk [vmem:[#allocation3] sm:$0x3] %vm654_vm0, %v2922_v0 }
  0xb7   : > { %657 = vst.msk [vmem:[#allocation4] sm:$0x3] %vm654_vm0, %v2922_v0  ;;  %658 = vst.msk [vmem:[#allocation5] sm:$0x3] %vm654_vm0, %v2922_v0 }
  0xb8   : > { %662 = vst.msk [vmem:[#allocation8] sm:$0x3] %vm654_vm0, %v2922_v0 }
  0xb9   : > { %660 = vst.msk [vmem:[#allocation6] sm:$0x3] %vm659_vm1, %v2922_v0  ;;  %661 = vst.msk [vmem:[#allocation7] sm:$0x3] %vm659_vm1, %v2922_v0 }
  0xba PF: > { %v3252_v1 = vld [vmem:[%s3782_s1] sm:$0xff]  ;;  %v3257_v2 = vld [vmem:[%s3782_s1 + $0x8] sm:$0xff]  ;;  %v3262_v3 = vld [vmem:[%s3782_s1 + $0x10] sm:$0xff]  ;;  %s3867_s6 = sld [smem:[#allocation56_spill]]  ;;  %s3444_s9 = smov 0  }
  0xbb   : > { %3850 = vst [vmem:[#allocation31_spill] sm:$0xff] %v3252_v1  ;;  %v3267_v4 = vld [vmem:[%s3782_s1 + $0x18] sm:$0xff]  ;;  %v3271_v6 = vld [vmem:[#allocation12 + $0x8] sm:$0xff]  ;;  %v3273_v7 = vld [vmem:[#allocation12 + $0x10] sm:$0xff] }
  0xbc   : > { %v3269_v5 = vld [vmem:[#allocation12] sm:$0xff]  ;;  %v3275_v8 = vld [vmem:[#allocation12 + $0x18] sm:$0xff]  ;;  %v3288_v13 = vld [vmem:[#allocation15 + $0x8] sm:$0xff] }
  0xbd   : > { %v3277_v9 = vld [vmem:[#allocation14] sm:$0x3]  ;;  %v3279_v10 = vld [vmem:[#allocation18] ss:$0 sm:$0xff]  ;;  %3853 = vst [vmem:[#allocation34_spill] sm:$0xff] %v3288_v13  ;;  %v3290_v14 = vld [vmem:[#allocation17] sm:$0xff] }
  0xbe   : > { %v3284_v11 = vld [vmem:[%s3785_s4] sm:$0xf]  ;;  %3854 = vst [vmem:[#allocation35_spill] sm:$0xff] %v3290_v14  ;;  %v3292_v15 = vld [vmem:[#allocation17 + $0x8] sm:$0xff]  ;;  %v3296_v17 = vld [vmem:[#allocation17 + $0x18] sm:$0xff] }
  0xbf   : > { %3851 = vst [vmem:[#allocation32_spill] sm:$0xff] %v3284_v11  ;;  %v3286_v12 = vld [vmem:[#allocation15] sm:$0xff]  ;;  %3855 = vst [vmem:[#allocation36_spill] sm:$0xff] %v3292_v15  ;;  %v3298_v18 = vld [vmem:[#allocation17 + $0x20] sm:$0xff] }
  0xc0   : > { %3852 = vst [vmem:[#allocation33_spill] sm:$0xff] %v3286_v12  ;;  %v3294_v16 = vld [vmem:[#allocation17 + $0x10] sm:$0xff]  ;;  %3857 = vst [vmem:[#allocation38_spill] sm:$0xff] %v3296_v17  ;;  %v3300_v19 = vld [vmem:[#allocation17 + $0x28] sm:$0xff] }
  0xc1   : > { %3856 = vst [vmem:[#allocation37_spill] sm:$0xff] %v3294_v16  ;;  %3858 = vst [vmem:[#allocation39_spill] sm:$0xff] %v3298_v18  ;;  %v3302_v20 = vld [vmem:[#allocation17 + $0x30] sm:$0xff]  ;;  %v3304_v21 = vld [vmem:[#allocation17 + $0x38] sm:$0xff] }
  0xc2   : > { %3859 = vst [vmem:[#allocation40_spill] sm:$0xff] %v3300_v19  ;;  %3860 = vst [vmem:[#allocation41_spill] sm:$0xff] %v3302_v20  ;;  %v3306_v22 = vld [vmem:[#allocation17 + $0x40] sm:$0xff]  ;;  %v3308_v23 = vld [vmem:[#allocation17 + $0x48] sm:$0xff] }
  0xc3   : > { %3861 = vst [vmem:[#allocation42_spill] sm:$0xff] %v3304_v21  ;;  %3862 = vst [vmem:[#allocation43_spill] sm:$0xff] %v3306_v22  ;;  %v3313_v24 = vld [vmem:[%s3788_s7] ss:$0 sm:$0xff]  ;;  %v3323_v26 = vld [vmem:[%s3789_s8 + $0x8] sm:$0xff] }
  0xc4   : > { %3863 = vst [vmem:[#allocation44_spill] sm:$0xff] %v3308_v23  ;;  %3864 = vst [vmem:[#allocation45_spill] sm:$0xff] %v3313_v24  ;;  %v3318_v25 = vld [vmem:[%s3789_s8] sm:$0xff]  ;;  %v3328_v27 = vld [vmem:[%s3789_s8 + $0x10] sm:$0xff] }
  0xc5   : > { %v3333_v28 = vld [vmem:[%s3789_s8 + $0x18] sm:$0xff]  ;;  %v3335_v29 = vld [vmem:[#allocation20] sm:$0x3f]  ;;  %v3345_v31 = vld [vmem:[%s3792_s11 + $0x8] sm:$0xff] }
  0xc6   : > { %3865 = vst [vmem:[#allocation46_spill] sm:$0xff] %v3335_v29  ;;  %v3340_v30 = vld [vmem:[%s3792_s11] sm:$0xff]  ;;  %v3350_v32 = vld [vmem:[%s3792_s11 + $0x10] sm:$0xff]  ;;  %v3355_v33 = vld [vmem:[%s3792_s11 + $0x18] sm:$0xff] }
  0xc7   : > { %3866 = vst [vmem:[#allocation47_spill] sm:$0xff] %v3340_v30  ;;  %v3360_v34 = vld [vmem:[%s3792_s11 + $0x20] sm:$0xff]  ;;  %v3365_v35 = vld [vmem:[%s3792_s11 + $0x28] sm:$0xff]  ;;  %v3370_v36 = vld [vmem:[%s3792_s11 + $0x30] sm:$0xff] }
  0xc8   : > { %v3375_v37 = vld [vmem:[%s3792_s11 + $0x38] sm:$0xff]  ;;  %v3380_v38 = vld [vmem:[%s3792_s11 + $0x40] sm:$0xff]  ;;  %v3385_v39 = vld [vmem:[%s3792_s11 + $0x48] sm:$0xff] }
  0xc9   : > { %v3390_v40 = vld [vmem:[%s3792_s11 + $0x50] sm:$0xff]  ;;  %v3395_v41 = vld [vmem:[%s3792_s11 + $0x58] sm:$0xff]  ;;  %v3397_v42 = vld [vmem:[#allocation21] ss:$0 sm:$0xff] }
  0xca   : > { %v3402_v43 = vld [vmem:[%s3794_s13] sm:$0xff]  ;;  %v3407_v44 = vld [vmem:[%s3794_s13 + $0x8] sm:$0xff]  ;;  %v3412_v45 = vld [vmem:[%s3794_s13 + $0x10] sm:$0xff] }
  0xcb   : > { %v3417_v46 = vld [vmem:[%s3794_s13 + $0x18] sm:$0xff]  ;;  %v3422_v47 = vld [vmem:[%s3794_s13 + $0x20] sm:$0xff]  ;;  %v3427_v48 = vld [vmem:[%s3794_s13 + $0x28] sm:$0xff] }
  0xcc   : > { %v3432_v49 = vld [vmem:[%s3794_s13 + $0x30] sm:$0xff]  ;;  %v3437_v50 = vld [vmem:[%s3794_s13 + $0x38] sm:$0xff]  ;;  %v3442_v51 = vld [vmem:[%s3867_s6] ss:$0 sm:$0xff] }
  0xcd LB: >> { %v3868_v29 = vld [vmem:[#allocation46_spill] sm:$0xff]  ;;  %vm727_vm2 = vcmask 1043456   ;;  %v3806_v52 = vmov 0.0   ;;  %vm2924_vm3 = vmmov 0   ;;  %v3869_v11 = vld [vmem:[#allocation32_spill] sm:$0xff]  ;;  %s3454_s28 = sshll.u32 %s2908_s9, 1  ;;  %s2908_s9 = sphi %s3444_s9, %s719_s9  }
  0xce   : >> { %2311 = vmatprep.subr.mxu1 %v3806_v52  ;;  %2313 = vmatprep.mubr.msk.f32.mxu1 %vm2924_vm3, %v3806_v52  ;;  %vm723_vm4 = vcmask 31744   ;;  %s721_s26 = scalar_lea.vmem %s3217_s5, %s3454_s28 [#allocation9]  ;;  %v3870_v23 = vld [vmem:[#allocation44_spill] sm:$0xff]  ;;  %s2925_s25 = smov 124   ;;  %v3871_v13 = vld [vmem:[#allocation34_spill] sm:$0xff]  ;;  %v3872_v22 = vld [vmem:[#allocation43_spill] sm:$0xff]  ;;  %vm806_vm5 = vcmask 130048  }
  0xcf   : >> { %2312 = vmatpush3.msk.msra.mxu1 %vm727_vm2, %v3869_v11  ;;  %2323 = vmatprep.subr.mxu0 %v3806_v52  ;;  %v3461_v53 = vld [vmem:[%s721_s26] sm:$0x3]  ;;  %v3873_v12 = vld [vmem:[#allocation33_spill] sm:$0xff]  ;;  %v3874_v21 = vld [vmem:[#allocation42_spill] sm:$0xff]  ;;  %s2926_s18 = smov 16   ;;  %s2927_s2 = smov 108  }
  0xd0   : >> { %2316 = vmatprep.subr.mxu1 %v3806_v52  ;;  %2324 = vmatpush3.msra.mxu0 %v3870_v23  ;;  %v3875_v20 = vld [vmem:[#allocation41_spill] sm:$0xff]  ;;  %v3876_v19 = vld [vmem:[#allocation40_spill] sm:$0xff]  ;;  %v3877_v18 = vld [vmem:[#allocation39_spill] sm:$0xff]  ;;  %s2928_s10 = smov 48   ;;  %s2929_s3 = smov 32   ;;  %vm896_vm6 = vcmask 392192  }
  0xd1   : >> { %2325 = vmatprep.subr.mxu0 %v3806_v52  ;;  %2343 = vmatprep.mubr.msk.f32.mxu0 %vm2924_vm3, %v3806_v52  ;;  %v3878_v17 = vld [vmem:[#allocation38_spill] sm:$0xff]  ;;  %v3879_v16 = vld [vmem:[#allocation37_spill] sm:$0xff]  ;;  %v3880_v15 = vld [vmem:[#allocation36_spill] sm:$0xff]  ;;  %vm904_vm7 = vcmask 654336   ;;  %s2930_s16 = smov 1   ;;  %s2931_s29 = smov 64  }
  0xd2   : >> { %2314 = vmatmul.mubr.msk.f32.vlgmr.msra.gmra.mxu1 %vm723_vm4, %v3461_v53  ;;  %802 = vrot.lane.b32.xlu0 %v3461_v53, %s2925_s25  ;;  %v3881_v14 = vld [vmem:[#allocation35_spill] sm:$0xff]  ;;  %v885_v54 = vld [vmem:[#allocation8] sm:$0x3]  ;;  %s2932_s6 = smov 127   ;;  %s2933_s26 = smov 60   ;;  %vm1033_vm8 = vcmask 121856  }
  0xd3   : >> { %2317 = vmatpush3.msra.mxu1 %v3871_v13  ;;  %2320 = vmatprep.mubr.msk.f32.mxu1 %vm2924_vm3, %v3806_v52  ;;  %v886_v55 = vld [vmem:[#allocation2] sm:$0x3]  ;;  %v985_v61 = vld [vmem:[#allocation3] sm:$0x3]  ;;  %v3884_v24 = vld [vmem:[#allocation45_spill] sm:$0xff]  ;;  %vm1028_vm9 = vcmask 7168   ;;  %s2002_s25 = scalar_lea.vmem %s3245_s19, %s3454_s28 [#allocation23] }
  0xd4   : >> { %2318 = vmatprep.subr.mxu1 %v3806_v52  ;;  %2326 = vmatpush3.msra.mxu0 %v3872_v22  ;;  %v3883_v30 = vld [vmem:[#allocation47_spill] sm:$0xff]  ;;  %vm1212_vm10 = vcmask 1045504   ;;  %vm1180_vm11 = vcmask 15360   ;;  %vm1185_vm12 = vcmask 23552   ;;  %vm1194_vm13 = vcmask 39936   ;;  %s719_s9 = sadd.s32 1, %s2908_s9  }
  0xd5   : >> { %2319 = vmatpush3.msra.mxu1 %v3873_v12  ;;  %2327 = vmatprep.subr.mxu0 %v3806_v52  ;;  %vm1199_vm14 = vcmask 48128   ;;  %vm1015_vm15 = vcmask 254976   ;;  %vm1301_vm0 = vcmask 261120   ;;  %v3885_v1 = vld [vmem:[#allocation31_spill] sm:$0xff]  ;;  %vm1499_vm1 = vcmask 130112   ;;  %p716_p1 = scmp.ge.s32.totalorder %s719_s9, 4  }
  0xd6   : >> { %2328 = vmatpush3.msra.mxu0 %v3874_v21  ;;  %888 = vrot.lane.b32.xlu1 %v885_v54, %s2926_s18  ;;  %vm1510_vm2 = vcmask 1041409   ;;  %s2936_s18 = smov 28   ;;  %p3888_p8 = scmp.ne.s32.totalorder (%p716_p1), %s3835_s14, 0 }
  0xd7   : >> { %2329 = vmatprep.subr.mxu0 %v3806_v52  ;;  %881 = vrot.lane.b32.xlu0 %v3461_v53, %s2927_s2  ;;  %s2937_s2 = smov 96   ;;  %s2938_s5 = smov (%p716_p1), [#allocation23]  }
  0xd8   : >> { %2330 = vmatpush3.msra.mxu0 %v3875_v20  ;;  %2346 = vmatprep.subr.msk.mxu1 %vm1212_vm10, %v3868_v29 }
  0xd9   : >> { %2331 = vmatprep.subr.mxu0 %v3806_v52 }
  0xda   : >> { %2332 = vmatpush3.msra.mxu0 %v3876_v19  ;;  %892 = vrot.lane.b32.xlu1 %v886_v55, %s2928_s10  ;;  %s1999_s10 = scalar_lea.vmem %s3243_s30, %s3454_s28  ;;  %s2824_s30 = sshll.u32 (%p716_p1), %s2938_s5, 4  ;;  %s2825_s30 = int_to_ptr.vmem [resolvable:$false] %s2824_s30 }
  0xdb   : >> { %2333 = vmatprep.subr.mxu0 %v3806_v52 }
  0xdc   : >> { %2334 = vmatpush3.msra.mxu0 %v3877_v18 }
  0xdd   : >> { %2335 = vmatprep.subr.mxu0 %v3806_v52 }
  0xde   : >> { %2336 = vmatpush3.msra.mxu0 %v3878_v17  ;;  %987 = vrot.lane.b32.xlu1 %v985_v61, %s2929_s3  ;;  %v3525_v61 = vld [vmem:[#allocation7] sm:$0x3] }
  0xdf   : >> { %2337 = vmatprep.subr.mxu0 %v3806_v52 }
  0xe0   : >> { %2338 = vmatpush3.msra.mxu0 %v3879_v16 }
  0xe1   : >> { %2339 = vmatprep.subr.mxu0 %v3806_v52 }
  0xe2   : >> { %2340 = vmatpush3.msra.mxu0 %v3880_v15 }
  0xe3   : >> { %2341 = vmatprep.subr.mxu0 %v3806_v52 }
  0xe4   : >> { %2342 = vmatpush3.msra.mxu0 %v3881_v14 }
  0xe5   : >> { %2379 = vmatprep.subr.mxu0 %v3806_v52 }
 0x144   : >> { %v803_v57 = vpop.permute.xlu0 %802 }
 0x148   : >> { %v889_v62 = vpop.permute.xlu1 %888 }
 0x149   : >> { %v882_v0 = vpop.permute.xlu0 %881 }
 0x14c   : >> { %v893_v55 = vpop.permute.xlu1 %892 }
 0x192   : >> { %v797_v56 = vpop.f32.mrf.mxu1 }
 0x193   : >> { %v801_v58 = vmax.f32 %v797_v56, 0.0 }
 0x194   : >> { %v2315_v59 = vpop.f32.mrf.mxu1 }
 0x195   : >> { %v805_v60 = vmul.f32 %v803_v57, %v801_v58  ;;  %v3882_v57 = vmov 0.0  }
 0x197   : >> { %2321 = vmatmul.mubr.msk.f32.vlgmr.msra.gmra.mxu1 %vm806_vm5, %v805_v60  ;;  %v3522_v60 = vld [vmem:[#allocation6] sm:$0x3] }
 0x198   : >> { %1025 = vrot.lane.b32.xlu1 %v3522_v60, %s2930_s16  ;;  %2347 = vmatpush3.msk.msra.mxu1 %vm1212_vm10, %v3868_v29 }
 0x199   : >> { %2354 = vmatprep.subr.mxu1 %v3882_v57 }
 0x19c   : >> { %1036 = vrot.lane.b32.xlu1 %v3525_v61, %s2930_s16 }
 0x257   : >> { %v876_v63 = vpop.f32.mrf.mxu1 }
 0x258   : >> { %v880_v54 = vmax.f32 %v876_v63, 0.0 }
 0x259   : >> { %v2322_v52 = vpop.f32.mrf.mxu1 }
 0x25a   : >> { %v884_v11 = vmul.f32 %v882_v0, %v880_v54 }
 0x25c   : >> { %v895_v56 = vsel %vm806_vm5, %v884_v11, %v889_v62 }
 0x25d   : >> { %v897_v59 = vsel %vm896_vm6, %v895_v56, %v893_v55  ;;  %vm2000_vm6 = vcmask 33792  }
 0x25e   : >> { %2344 = vmatmul.mubr.msk.f32.vlgmr.msra.gmra.mxu0 %vm904_vm7, %v897_v59 }
 0x25f   : >> { %2380 = vmatpush3.msra.mxu0 %v3395_v41  ;;  %2403 = vmatprep.mubr.msk.f32.mxu0 %vm2924_vm3, %v3882_v57 }
 0x260   : >> { %2381 = vmatprep.subr.mxu0 %v3882_v57 }
 0x261   : >> { %2382 = vmatpush3.msra.mxu0 %v3390_v40 }
 0x262   : >> { %2383 = vmatprep.subr.mxu0 %v3882_v57 }
 0x263   : >> { %2384 = vmatpush3.msra.mxu0 %v3385_v39 }
 0x264   : >> { %2385 = vmatprep.subr.mxu0 %v3882_v57 }
 0x265   : >> { %2386 = vmatpush3.msra.mxu0 %v3380_v38 }
 0x266   : >> { %2387 = vmatprep.subr.mxu0 %v3882_v57 }
 0x267   : >> { %2388 = vmatpush3.msra.mxu0 %v3375_v37 }
 0x268   : >> { %2389 = vmatprep.subr.mxu0 %v3882_v57 }
 0x269   : >> { %2390 = vmatpush3.msra.mxu0 %v3370_v36 }
 0x26a   : >> { %2391 = vmatprep.subr.mxu0 %v3882_v57 }
 0x26b   : >> { %2392 = vmatpush3.msra.mxu0 %v3365_v35 }
 0x26c   : >> { %2393 = vmatprep.subr.mxu0 %v3882_v57 }
 0x26d   : >> { %2394 = vmatpush3.msra.mxu0 %v3360_v34 }
 0x26e   : >> { %2395 = vmatprep.subr.mxu0 %v3882_v57 }
 0x26f   : >> { %2396 = vmatpush3.msra.mxu0 %v3355_v33 }
 0x270   : >> { %2397 = vmatprep.subr.mxu0 %v3882_v57 }
 0x271   : >> { %2398 = vmatpush3.msra.mxu0 %v3350_v32 }
 0x272   : >> { %2399 = vmatprep.subr.mxu0 %v3882_v57 }
 0x273   : >> { %2400 = vmatpush3.msra.mxu0 %v3345_v31 }
 0x274   : >> { %2401 = vmatprep.subr.mxu0 %v3882_v57 }
 0x275   : >> { %2402 = vmatpush3.msra.mxu0 %v3883_v30 }
 0x31e   : >> { %v974_v11 = vpop.f32.mrf.mxu0 }
 0x31f   : >> { %v975_v52 = vadd.f32 %v3884_v24, %v974_v11  ;;  %v3808_v11 = vlaneseq }
 0x320   : >> { %v2345_v58 = vpop.f32.mrf.mxu0 }
 0x321   : >> { %2574 = vtanh.f32 %v975_v52  ;;  %v2235_v63 = vmul.f32 -1.442695, %v975_v52  ;;  %v3535_v58 = vshrl.u32 %v3808_v11, 7 }
 0x323   : >> { %2576 = vpow2.f32 %v2235_v63  ;;  %v3539_v52 = vsub.s32 0, %v3535_v58  ;;  %v988_v63 = vpop.permute.xlu1 %987 }
 0x32e   : >> { %v2575_v62 = vpop.eup %2574 }
 0x32f   : >> { %992 = vrot.lane.b32.xlu0 %v2575_v62, %s2931_s29  ;;  %v1069_v62 = vrot.slane %v3522_v60, %v3539_v52 }
 0x330   : >> { %v2577_v0 = vpop.eup %2576 }
 0x331   : >> { %v981_v54 = vadd.f32 1.0, %v2577_v0  ;;  %v1026_v0 = vpop.permute.xlu1 %1025 }
 0x333   : >> { %2578 = vrcp.f32 %v981_v54 }
 0x335   : >> { %v1037_v11 = vpop.permute.xlu1 %1036 }
 0x336   : >> { %v1039_v14 = vsel %vm1028_vm9, 0.0, %v1037_v11  ;;  %v1135_v11 = vrot.slane %v3525_v61, %v3539_v52 }
 0x340   : >> { %v3529_v55 = vpop.eup %2578 }
 0x341   : >> { %v990_v54 = vmul.f32 %v3529_v55, %v988_v63  ;;  %v3553_v63 = vsub.s32 1, %v3535_v58 }
 0x3a1   : >> { %v993_v56 = vpop.permute.xlu0 %992 }
 0x3a2   : >> { %v995_v59 = vmul.f32 %v3529_v55, %v993_v56 }
 0x3a4   : >> { %997 = vrot.lane.b32.xlu0 %v995_v59, %s2929_s3 }
 0x3a8   : >> { %1030 = vrot.lane.b32.xlu0 %v3522_v60, %s2932_s6 }
 0x3ac   : >> { %1040 = vrot.lane.b32.xlu0 %v3525_v61, %s2932_s6  ;;  %s3887_s6 = sld [smem:[#allocation57_spill]] (%p716_p1) }
 0x3b0   : >> { %1007 = vrot.lane.b32.xlu0 %v3461_v53, %s2933_s26  ;;  %s2027_s26 = sshll.u32 (%p716_p1), %s3245_s19, 4  ;;  %s3738_s26 = int_to_ptr.vmem [resolvable:$true] %s2027_s26 }
 0x3b1   : > { %p2827_p2 = scmp.lt.s32.totalorder (%p716_p1), %s3738_s26, %s2825_s30 }
 0x3b4   : >> { %1071 = vbcast.lane.b32.xlu0 %v1069_v62, 256 }
 0x3b8   : >> { %1075 = vbcast.lane.b32.xlu0 %v1069_v62, 264  ;;  %v1113_v62 = vrot.slane %v1039_v14, %v3539_v52 }
 0x416   : >> { %v998_v56 = vpop.permute.xlu0 %997 }
 0x417   : >> { %v3545_v59 = vadd.f32 %v998_v56, %v990_v54  ;;  %v1029_v54 = vsel %vm1028_vm9, 0.0, %v1026_v0  ;;  %v1124_v0 = vrot.slane %v1039_v14, %v3553_v63 }
 0x418   : >> { %v1058_v56 = vrot.slane %v1029_v54, %v3553_v63 }
 0x419   : >> { %2580 = vtanh.f32 %v3545_v59 }
 0x41a   : >> { %v1031_v12 = vpop.permute.xlu0 %1030 }
 0x41b   : >> { %v1034_v13 = vsel %vm1033_vm8, %v1031_v12, 0.0  ;;  %v1047_v12 = vrot.slane %v1029_v54, %v3539_v52  ;;  %v1080_v54 = vrot.slane %v3522_v60, %v3553_v63 }
 0x41c   : >> { %v1091_v15 = vrot.slane %v1034_v13, %v3539_v52  ;;  %v1102_v17 = vrot.slane %v1034_v13, %v3553_v63 }
 0x41e   : >> { %1097 = vbcast.lane.b32.xlu0 %v1091_v15, 264  ;;  %v1041_v18 = vpop.permute.xlu0 %1040 }
 0x422   : >> { %1119 = vbcast.lane.b32.xlu0 %v1113_v62, 264  ;;  %v1008_v14 = vpop.permute.xlu0 %1007 }
 0x426   : >> { %v2581_v16 = vpop.eup %2580  ;;  %1060 = vbcast.lane.b32.xlu0 %v1058_v56, 256 }
 0x427   : >> { %1003 = vrot.lane.b32.xlu1 %v2581_v16, %s2931_s29  ;;  %v1146_v16 = vrot.slane %v3525_v61, %v3553_v63 }
 0x42a   : >> { %1141 = vbcast.lane.b32.xlu0 %v1135_v11, 264 }
 0x42b   : >> { %1049 = vbcast.lane.b32.xlu1 %v1047_v12, 256 }
 0x42e   : >> { %1064 = vbcast.lane.b32.xlu0 %v1058_v56, 264  ;;  %v1043_v56 = vsel %vm1033_vm8, %v1041_v18, 0.0 }
 0x42f   : >> { %1053 = vbcast.lane.b32.xlu1 %v1047_v12, 264  ;;  %v1168_v13 = vrot.slane %v1043_v56, %v3553_v63 }
 0x432   : >> { %1104 = vbcast.lane.b32.xlu0 %v1102_v17, 256 }
 0x433   : >> { %1093 = vbcast.lane.b32.xlu1 %v1091_v15, 256  ;;  %v1157_v15 = vrot.slane %v1043_v56, %v3539_v52 }
 0x436   : >> { %1108 = vbcast.lane.b32.xlu0 %v1102_v17, 264  ;;  %v1072_v17 = vpop.permute.xlu0 %1071 }
 0x437   : >> { %1115 = vbcast.lane.b32.xlu1 %v1113_v62, 256 }
 0x43a   : >> { %1130 = vbcast.lane.b32.xlu0 %v1124_v0, 264  ;;  %v1076_v18 = vpop.permute.xlu0 %1075 }
 0x43b   : >> { %1137 = vbcast.lane.b32.xlu1 %v1135_v11, 256 }
 0x43e   : >> { %1152 = vbcast.lane.b32.xlu0 %v1146_v16, 264 }
 0x43f   : >> { %1082 = vbcast.lane.b32.xlu1 %v1080_v54, 256 }
 0x442   : >> { %1174 = vbcast.lane.b32.xlu0 %v1168_v13, 264 }
 0x443   : >> { %1159 = vbcast.lane.b32.xlu1 %v1157_v15, 256 }
 0x447   : >> { %1086 = vbcast.lane.b32.xlu1 %v1080_v54, 264 }
 0x44b   : >> { %1163 = vbcast.lane.b32.xlu1 %v1157_v15, 264 }
 0x44f   : >> { %1126 = vbcast.lane.b32.xlu1 %v1124_v0, 256 }
 0x453   : >> { %1148 = vbcast.lane.b32.xlu1 %v1146_v16, 256 }
 0x457   : >> { %1170 = vbcast.lane.b32.xlu1 %v1168_v13, 256 }
 0x490   : >> { %v1098_v60 = vpop.permute.xlu0 %1097 }
 0x494   : >> { %v1120_v62 = vpop.permute.xlu0 %1119 }
 0x498   : >> { %v1061_v54 = vpop.permute.xlu0 %1060 }
 0x499   : >> { %v1004_v12 = vpop.permute.xlu1 %1003 }
 0x49a   : >> { %v1006_v11 = vmul.f32 %v3529_v55, %v1004_v12 }
 0x49c   : >> { %v1010_v56 = vmul.f32 %v1008_v14, %v1006_v11  ;;  %v1142_v21 = vpop.permute.xlu0 %1141 }
 0x49d   : >> { %v1050_v19 = vpop.permute.xlu1 %1049 }
 0x49e   : >> { %1018 = vrot.lane.b32.xlu1 %v1010_v56, %s2929_s3  ;;  %v1176_v16 = vsel %vm1028_vm9, %v1050_v19, %v1072_v17 }
 0x4a0   : >> { %v1065_v15 = vpop.permute.xlu0 %1064 }
 0x4a1   : >> { %v1054_v20 = vpop.permute.xlu1 %1053 }
 0x4a2   : >> { %v1177_v12 = vsel %vm1028_vm9, %v1054_v20, %v1076_v18 }
 0x4a3   : >> { %v1182_v29 = vsel %vm1180_vm11, %v1177_v12, %v1098_v60 }
 0x4a4   : >> { %v1105_v24 = vpop.permute.xlu0 %1104 }
 0x4a5   : >> { %v1094_v22 = vpop.permute.xlu1 %1093 }
 0x4a6   : >> { %v1181_v13 = vsel %vm1180_vm11, %v1176_v16, %v1094_v22  ;;  %v1187_v22 = vsel %vm1185_vm12, %v1182_v29, %v1120_v62 }
 0x4a8   : >> { %v1109_v56 = vpop.permute.xlu0 %1108 }
 0x4a9   : >> { %v1116_v0 = vpop.permute.xlu1 %1115 }
 0x4aa   : >> { %v1186_v55 = vsel %vm1185_vm12, %v1181_v13, %v1116_v0  ;;  %v1191_v0 = vsel %vm723_vm4, %v1187_v22, %v1142_v21 }
 0x4ac   : >> { %v1131_v16 = vpop.permute.xlu0 %1130 }
 0x4ad   : >> { %v1138_v23 = vpop.permute.xlu1 %1137 }
 0x4ae   : >> { %v1190_v11 = vsel %vm723_vm4, %v1186_v55, %v1138_v23 }
 0x4b1   : >> { %v1083_v14 = vpop.permute.xlu1 %1082 }
 0x4b2   : >> { %v1178_v23 = vsel %vm1028_vm9, %v1061_v54, %v1083_v14 }
 0x4b3   : >> { %v1183_v29 = vsel %vm1180_vm11, %v1178_v23, %v1105_v24 }
 0x4b5   : >> { %v1160_v30 = vpop.permute.xlu1 %1159 }
 0x4b6   : >> { %v1195_v19 = vsel %vm1194_vm13, %v1190_v11, %v1160_v30  ;;  %v1153_v30 = vpop.permute.xlu0 %1152 }
 0x4b7   : >> { %2348 = vmatprep.mubr.msk.f32.mxu1 %vm1199_vm14, %v1195_v19  ;;  %v1445_v19 = vrot.slane %v3277_v9, %v3539_v52 }
 0x4b9   : >> { %v1087_v17 = vpop.permute.xlu1 %1086  ;;  %1447 = vbcast.lane.b32.xlu1 %v1445_v19, 256 }
 0x4ba   : >> { %v1179_v20 = vsel %vm1028_vm9, %v1065_v15, %v1087_v17  ;;  %v1175_v14 = vpop.permute.xlu0 %1174 }
 0x4bb   : >> { %v1184_v60 = vsel %vm1180_vm11, %v1179_v20, %v1109_v56 }
 0x4bc   : >> { %v1189_v21 = vsel %vm1185_vm12, %v1184_v60, %v1131_v16  ;;  %v2934_v16 = vmov 1966171168  }
 0x4bd   : >> { %v1164_v18 = vpop.permute.xlu1 %1163  ;;  %v1193_v55 = vsel %vm723_vm4, %v1189_v21, %v1153_v30 }
 0x4be   : >> { %v1196_v13 = vsel %vm1194_vm13, %v1191_v0, %v1164_v18  ;;  %v1198_v11 = vsel %vm1194_vm13, %v1193_v55, %v1175_v14  ;;  %v1376_v0 = vunpack.c.l.s4 %v2934_v16 }
 0x4bf   : >> { %2349 = vmatmul.mubr.msk.f32.vlgmr.msra.gmra.mxu1 %vm1199_vm14, %v1196_v13 }
 0x4c0   : >> { %2355 = vmatpush3.msra.mxu1 %v3333_v28  ;;  %v1377_v18 = vunpack.c.0.s8 %v1376_v0 }
 0x4c1   : >> { %v1127_v62 = vpop.permute.xlu1 %1126  ;;  %2356 = vmatprep.subr.mxu1 %v3882_v57 }
 0x4c2   : >> { %2357 = vmatpush3.msra.mxu1 %v3328_v27  ;;  %v1188_v54 = vsel %vm1185_vm12, %v1183_v29, %v1127_v62  ;;  %v1380_v13 = vsub.s32 %v1377_v18, %v3535_v58 }
 0x4c3   : >> { %2358 = vmatprep.subr.mxu1 %v3882_v57 }
 0x4c4   : >> { %2359 = vmatpush3.msra.mxu1 %v3323_v26 }
 0x4c5   : >> { %v1149_v15 = vpop.permute.xlu1 %1148  ;;  %2360 = vmatprep.subr.mxu1 %v3882_v57 }
 0x4c6   : >> { %2361 = vmatpush3.msra.mxu1 %v3318_v25  ;;  %v1192_v24 = vsel %vm723_vm4, %v1188_v54, %v1149_v15  ;;  %vm1513_vm4 = vcmask 123904  }
 0x4c7   : >> { %2365 = vmatprep.subr.mxu1 %v3882_v57 }
 0x4c9   : >> { %v1171_v12 = vpop.permute.xlu1 %1170 }
 0x4ca   : >> { %v1197_v56 = vsel %vm1194_vm13, %v1192_v24, %v1171_v12 }
 0x4cb   : >> { %2351 = vmatprep.mubr.msk.f32.mxu1 %vm1199_vm14, %v1197_v56 }
 0x4cc   : >> { %2352 = vmatmul.mubr.msk.f32.gmra.mxu1 %vm1199_vm14, %v1198_v11 }
 0x4cd   : >> { %2362 = vmatprep.mubr.msk.f32.mxu1 %vm2924_vm3, %v3882_v57 }
 0x510   : >> { %v3611_v22 = vpop.permute.xlu1 %1018 }
 0x511   : >> { %1021 = vst.msk [vmem:[#allocation2] sm:$0x3] %vm1015_vm15, %v3611_v22  ;;  %2363 = vmatmul.mubr.msk.f32.vlgmr.msra.gmra.mxu1 %vm1301_vm0, %v3611_v22 }
 0x512   : >> { %2366 = vmatpush3.msra.mxu1 %v3257_v2  ;;  %2369 = vmatprep.mubr.msk.f32.mxu1 %vm2924_vm3, %v3882_v57 }
 0x513   : >> { %2367 = vmatprep.subr.mxu1 %v3882_v57 }
 0x514   : >> { %2368 = vmatpush3.msra.mxu1 %v3885_v1 }
 0x515   : >> { %2372 = vmatprep.subr.mxu1 %v3882_v57 }
 0x57f   : >> { %v2350_v17 = vpop.f32.mrf.mxu1 }
 0x581   : >> { %v1282_v20 = vpop.f32.mrf.mxu1 }
 0x58c   : >> { %v2353_v23 = vpop.f32.mrf.mxu1 }
 0x58e   : >> { %v1292_v60 = vpop.f32.mrf.mxu1 }
 0x5d1   : >> { %v1370_v30 = vpop.f32.mrf.mxu1 }
 0x5d2   : >> { %v1381_v29 = vrot.slane %v1370_v30, %v1380_v13 }
 0x5d3   : >> { %v2364_v62 = vpop.f32.mrf.mxu1 }
 0x5d4   : >> { %v1382_v21 = vcombine.high %v1381_v29, %v1381_v29  ;;  %v1389_v54 = vrot.slane %v1381_v29, %v1380_v13 }
 0x5d6   : >> { %v1396_v15 = vrot.slane %v1382_v21, %v1380_v13  ;;  %v1400_v55 = vrot.slane %v1389_v54, %v3539_v52 }
 0x5d8   : >> { %v1404_v14 = vrot.slane %v1396_v15, %v3539_v52  ;;  %v1407_v24 = vadd.f32 %v1400_v55, %v1282_v20  ;;  %v1408_v12 = vadd.f32 %v2350_v17, %v1400_v55 }
 0x5da   : >> { %v1412_v11 = vadd.f32 %v1408_v12, %v3271_v6  ;;  %v1411_v56 = vadd.f32 %v1407_v24, %v3269_v5  ;;  %v1409_v16 = vadd.f32 %v1404_v14, %v1292_v60  ;;  %v1410_v0 = vadd.f32 %v2353_v23, %v1404_v14 }
 0x5db   : >> { %v2935_v24 = vmov 0   ;;  %v1456_v12 = vrot.slane %v3277_v9, %v3553_v63 }
 0x5dc   : >> { %2582 = vtanh.f32 %v1412_v11  ;;  %v1413_v18 = vadd.f32 %v1409_v16, %v3273_v7  ;;  %v1414_v30 = vadd.f32 %v1410_v0, %v3275_v8  ;;  %2572 = vset.pattern.permute.xlu0 %v2935_v24  ;;  %2573 = vset.pattern.permute.xlu1 %v2935_v24  ;;  %v1448_v11 = vpop.permute.xlu1 %1447 }
 0x5dd   : >> { %2584 = vtanh.f32 %v1411_v56 }
 0x5de   : >> { %2586 = vtanh.f32 %v1413_v18 }
 0x5df   : >> { %2588 = vtanh.f32 %v1414_v30 }
 0x5e9   : >> { %v2583_v13 = vpop.eup %2582 }
 0x5ea   : >> { %v2585_v29 = vpop.eup %2584  ;;  %v1426_v62 = vmul.f32 %v2583_v13, %v3279_v10 }
 0x5eb   : >> { %v2587_v20 = vpop.eup %2586  ;;  %v1425_v17 = vmul.f32 %v2585_v29, %v3279_v10 }
 0x5ec   : >> { %v1432_v21 = vsel %vm806_vm5, %v1426_v62, 0.0  ;;  %v1427_v60 = vmul.f32 %v2587_v20, %v3279_v10  ;;  %v2589_v54 = vpop.eup %2588 }
 0x5ed   : >> { %1433 = vadd.xlane.f32.xlu1 %v1432_v21  ;;  %v1429_v23 = vsel %vm806_vm5, %v1425_v17, 0.0  ;;  %v1428_v55 = vmul.f32 %v2589_v54, %v3279_v10 }
 0x5ee   : >> { %1430 = vadd.xlane.f32.xlu0 %v1429_v23  ;;  %v1435_v15 = vsel %vm806_vm5, %v1427_v60, 0.0  ;;  %v3886_v23 = vlaneseq }
 0x5ef   : >> { %v1438_v14 = vsel %vm806_vm5, %v1428_v55, 0.0 }
 0x5f0   : >> { %v1489_v60 = vand.u32 127, %v3886_v23 }
 0x5f2   : >> { %1436 = vadd.xlane.f32.xlu0 %v1435_v15  ;;  %v1494_v54 = vadd.s32 4294967288, %v1489_v60  ;;  %v3642_v55 = vsub.s32 %v1489_v60, %v3535_v58 }
 0x5f6   : >> { %1439 = vadd.xlane.f32.xlu0 %v1438_v14  ;;  %v3645_v14 = vsub.s32 %v1494_v54, %v3535_v58 }
 0x5fe   : >> { %1458 = vbcast.lane.b32.xlu1 %v1456_v12, 256 }
 0x602   : >> { %1462 = vbcast.lane.b32.xlu1 %v1456_v12, 264 }
 0x60c   : >> { %1451 = vbcast.lane.b32.xlu0 %v1445_v19, 264 }
 0x676   : >> { %v1434_v56 = vpop.xlane.xlu1 %1433 }
 0x677   : >> { %v1431_v16 = vpop.xlane.xlu0 %1430 }
 0x678   : >> { %v1468_v0 = vadd.f32 %v1448_v11, %v1431_v16 }
 0x67a   : >> { %1477 = vperm.xlu0 %2572, %v1468_v0   ;;  %v1459_v18 = vpop.permute.xlu1 %1458 }
 0x67b   : >> { %v1437_v30 = vpop.xlane.xlu0 %1436 }
 0x67c   : >> { %v1470_v21 = vadd.f32 %v1459_v18, %v1437_v30 }
 0x67e   : >> { %v1463_v13 = vpop.permute.xlu1 %1462 }
 0x67f   : >> { %v1440_v29 = vpop.xlane.xlu0 %1439 }
 0x680   : >> { %v1471_v62 = vadd.f32 %v1463_v13, %v1440_v29 }
 0x682   : >> { %1486 = vperm.xlu0 %2572, %v1471_v62  }
 0x683   : >> { %v1452_v20 = vpop.permute.xlu0 %1451 }
 0x684   : >> { %v1469_v17 = vadd.f32 %v1452_v20, %v1434_v56 }
 0x686   : >> { %1480 = vperm.xlu1 %2573, %v1469_v17  }
 0x68a   : >> { %1483 = vperm.xlu1 %2573, %v1470_v21  }
 0x6f5   : >> { %v1478_v19 = vpop.permute.xlu0 %1477 }
 0x6f6   : >> { %v1493_v56 = vrot.slane %v1478_v19, %v3642_v55 }
 0x6fd   : >> { %v1487_v24 = vpop.permute.xlu0 %1486 }
 0x6fe   : >> { %v1508_v16 = vrot.slane %v1487_v24, %v3645_v14 }
 0x701   : >> { %v1481_v15 = vpop.permute.xlu1 %1480 }
 0x702   : >> { %v1498_v12 = vrot.slane %v1481_v15, %v3645_v14 }
 0x704   : >> { %v1500_v30 = vsel %vm1499_vm1, %v1498_v12, %v1493_v56 }
 0x705   : >> { %v1484_v11 = vpop.permute.xlu1 %1483 }
 0x706   : >> { %v1504_v18 = vrot.slane %v1484_v11, %v3642_v55 }
 0x708   : >> { %v1509_v13 = vsel %vm1499_vm1, %v1508_v16, %v1504_v18 }
 0x709   : >> { %v1511_v58 = vsel %vm1510_vm2, %v1509_v13, %v1500_v30 }
 0x70a   : >> { %v1514_v29 = vsel %vm1513_vm4, %v1511_v58, -inf }
 0x70b   : >> { %1515 = vmax.xlane.f32.xlu1 %v1514_v29 }
 0x794   : >> { %v1516_v20 = vpop.xlane.xlu1 %1515 }
 0x795   : >> { %v1521_v23 = vrot.slane %v1516_v20, %v3539_v52  ;;  %v1525_v60 = vrot.slane %v1516_v20, %v3553_v63 }
 0x797   : >> { %v1528_v54 = vsub.f32 %v1468_v0, %v1521_v23  ;;  %v1529_v19 = vsub.f32 %v1469_v17, %v1521_v23  ;;  %v1530_v24 = vsub.f32 %v1470_v21, %v1525_v60  ;;  %v1531_v1 = vsub.f32 %v1471_v62, %v1525_v60 }
 0x799   : >> { %v1532_v15 = vmul.f32 1.442695, %v1528_v54  ;;  %v1534_v11 = vmul.f32 1.442695, %v1529_v19  ;;  %v1536_v12 = vmul.f32 1.442695, %v1530_v24 }
 0x79a   : >> { %v1538_v56 = vmul.f32 1.442695, %v1531_v1 }
 0x79b   : >> { %2590 = vpow2.f32 %v1532_v15 }
 0x79c   : >> { %2592 = vpow2.f32 %v1534_v11 }
 0x79d   : >> { %2594 = vpow2.f32 %v1536_v12 }
 0x79e   : >> { %2596 = vpow2.f32 %v1538_v56 }
 0x7a8   : >> { %v2591_v16 = vpop.eup %2590 }
 0x7a9   : >> { %1545 = vperm.xlu0 %2572, %v2591_v16   ;;  %v2593_v18 = vpop.eup %2592 }
 0x7aa   : >> { %v2595_v30 = vpop.eup %2594 }
 0x7ab   : >> { %v2597_v13 = vpop.eup %2596 }
 0x7ad   : >> { %1548 = vperm.xlu0 %2572, %v2593_v18  }
 0x7b1   : >> { %1551 = vperm.xlu0 %2572, %v2595_v30  }
 0x7b5   : >> { %1554 = vperm.xlu0 %2572, %v2597_v13  }
 0x824   : >> { %v1546_v0 = vpop.permute.xlu0 %1545 }
 0x825   : >> { %v1559_v62 = vrot.slane %v1546_v0, %v3642_v55 }
 0x828   : >> { %v1549_v17 = vpop.permute.xlu0 %1548 }
 0x829   : >> { %v1563_v21 = vrot.slane %v1549_v17, %v3645_v14 }
 0x82b   : >> { %v1564_v23 = vsel %vm1499_vm1, %v1563_v21, %v1559_v62 }
 0x82c   : >> { %v1552_v58 = vpop.permute.xlu0 %1551 }
 0x82d   : >> { %v1568_v20 = vrot.slane %v1552_v58, %v3642_v55 }
 0x830   : >> { %v1555_v29 = vpop.permute.xlu0 %1554 }
 0x831   : >> { %v1572_v1 = vrot.slane %v1555_v29, %v3645_v14 }
 0x833   : >> { %v1573_v60 = vsel %vm1499_vm1, %v1572_v1, %v1568_v20 }
 0x834   : >> { %v1574_v54 = vsel %vm1510_vm2, %v1573_v60, %v1564_v23 }
 0x835   : >> { %v1576_v19 = vsel %vm1513_vm4, %v1574_v54, 0.0 }
 0x836   : >> { %1577 = vadd.xlane.f32.xlu0 %v1576_v19 }
 0x8bf   : >> { %v1578_v15 = vpop.xlane.xlu0 %1577 }
 0x8c0   : >> { %v1583_v24 = vrot.slane %v1578_v15, %v3539_v52  ;;  %v1587_v11 = vrot.slane %v1578_v15, %v3553_v63 }
 0x8c2   : >> { %2598 = vrcp.f32 %v1583_v24 }
 0x8c3   : >> { %2600 = vrcp.f32 %v1587_v11  ;;  %v1785_v11 = vld [vmem:[#allocation4] sm:$0x3] }
 0x8cf   : >> { %v2599_v12 = vpop.eup %2598 }
 0x8d0   : >> { %v1592_v56 = vmul.f32 %v2599_v12, %v2593_v18  ;;  %v1591_v0 = vmul.f32 %v2599_v12, %v2591_v16  ;;  %v2601_v17 = vpop.eup %2600 }
 0x8d1   : >> { %v1594_v58 = vmul.f32 %v2601_v17, %v2595_v30  ;;  %v1595_v21 = vmul.f32 %v2601_v17, %v2597_v13 }
 0x8d2   : >> { %1604 = vperm.xlu0 %2572, %v1592_v56   ;;  %1601 = vperm.xlu1 %2573, %v1591_v0  }
 0x8d6   : >> { %1607 = vperm.xlu1 %2573, %v1594_v58  }
 0x8da   : >> { %1610 = vperm.xlu1 %2573, %v1595_v21  }
 0x94d   : >> { %v1605_v29 = vpop.permute.xlu0 %1604  ;;  %v1602_v62 = vpop.permute.xlu1 %1601 }
 0x94e   : >> { %v1619_v52 = vrot.slane %v1605_v29, %v3645_v14  ;;  %v1615_v63 = vrot.slane %v1602_v62, %v3642_v55 }
 0x950   : >> { %v1620_v20 = vsel %vm1499_vm1, %v1619_v52, %v1615_v63 }
 0x951   : >> { %2370 = vmatmul.mubr.msk.f32.vlgmr.msra.gmra.mxu1 %vm806_vm5, %v1620_v20  ;;  %v1608_v16 = vpop.permute.xlu1 %1607 }
 0x952   : >> { %2373 = vmatpush3.msra.mxu1 %v3267_v4  ;;  %2376 = vmatprep.mubr.msk.f32.mxu1 %vm2924_vm3, %v3882_v57  ;;  %v1624_v30 = vrot.slane %v1608_v16, %v3642_v55 }
 0x953   : >> { %2374 = vmatprep.subr.mxu1 %v3882_v57 }
 0x954   : >> { %2375 = vmatpush3.msra.mxu1 %v3262_v3 }
 0x955   : >> { %v1611_v18 = vpop.permute.xlu1 %1610  ;;  %2406 = vmatprep.subr.mxu1 %v3882_v57 }
 0x956   : >> { %v1628_v13 = vrot.slane %v1611_v18, %v3645_v14  ;;  %v1883_v14 = vld [vmem:[#allocation5] sm:$0x3] }
 0x957   : >> { %1885 = vrot.lane.b32.xlu0 %v1883_v14, %s2929_s3 }
 0x958   : >> { %v1629_v1 = vsel %vm1499_vm1, %v1628_v13, %v1624_v30 }
 0x959   : >> { %v1630_v23 = vsel %vm1510_vm2, %v1629_v1, %v1620_v20  ;;  %2377 = vmatmul.mubr.msk.f32.vlgmr.msra.gmra.mxu1 %vm806_vm5, %v1629_v1  ;;  %vm1802_vm5 = vcmask 785408  }
 0x95a   : >> { %1632 = vst.msk [vmem:[#allocation6] sm:$0x3] %vm1513_vm4, %v1630_v23  ;;  %v1633_v60 = vadd.f32 %v1630_v23, %v3525_v61  ;;  %2003 = vst.msk [vmem:[%s2002_s25] sm:$0x3] %vm1513_vm4, %v1630_v23  ;;  %2407 = vmatpush3.msra.mxu1 %v3437_v50  ;;  %2422 = vmatprep.mubr.msk.f32.mxu1 %vm2924_vm3, %v3882_v57  ;;  %vm1794_vm3 = vcmask 523264   ;;  %s2010_s25 = scalar_lea.sflag (%p716_p1), [#allocation11], %s3213_s12 }
 0x95b   : >> { %2408 = vmatprep.subr.mxu1 %v3882_v57 }
 0x95c   : >> { %1634 = vst.msk [vmem:[#allocation7] sm:$0x3] %vm1513_vm4, %v1633_v60  ;;  %2409 = vmatpush3.msra.mxu1 %v3432_v49 }
 0x95d   : >> { %2410 = vmatprep.subr.mxu1 %v3882_v57 }
 0x95e   : >> { %2411 = vmatpush3.msra.mxu1 %v3427_v48 }
 0x95f   : >> { %2412 = vmatprep.subr.mxu1 %v3882_v57 }
 0x960   : >> { %2413 = vmatpush3.msra.mxu1 %v3422_v47 }
 0x961   : >> { %2414 = vmatprep.subr.mxu1 %v3882_v57 }
 0x962   : >> { %2415 = vmatpush3.msra.mxu1 %v3417_v46 }
 0x963   : >> { %2416 = vmatprep.subr.mxu1 %v3882_v57 }
 0x964   : >> { %2417 = vmatpush3.msra.mxu1 %v3412_v45 }
 0x965   : >> { %2418 = vmatprep.subr.mxu1 %v3882_v57 }
 0x966   : >> { %2419 = vmatpush3.msra.mxu1 %v3407_v44 }
 0x967   : >> { %2420 = vmatprep.subr.mxu1 %v3882_v57 }
 0x968   : >> { %2421 = vmatpush3.msra.mxu1 %v3402_v43 }
 0x9c9   : >> { %v1886_v18 = vpop.permute.xlu0 %1885 }
 0xa11   : >> { %v1703_v61 = vpop.f32.mrf.mxu1 }
 0xa13   : >> { %v2371_v55 = vpop.f32.mrf.mxu1 }
 0xa19   : >> { %v1775_v54 = vpop.f32.mrf.mxu1 }
 0xa1a   : >> { %v1781_v19 = vrot.slane %v1775_v54, 7 }
 0xa1b   : >> { %v2378_v15 = vpop.f32.mrf.mxu1 }
 0xa1c   : >> { %v1782_v24 = vsel %vm1510_vm2, %v1781_v19, %v1703_v61 }
 0xa1d   : >> { %1786 = vrot.lane.b32.xlu1 %v1782_v24, %s2929_s3  ;;  %1784 = vst.msk [vmem:[#allocation8] sm:$0x3] %vm1015_vm15, %v1782_v24 }
 0xa21   : >> { %1790 = vrot.lane.b32.xlu1 %v1785_v11, %s2931_s29 }
 0xa8f   : >> { %v1787_v57 = vpop.permute.xlu1 %1786 }
 0xa90   : >> { %v1793_v12 = vsel %vm1301_vm0, %v3611_v22, %v1787_v57 }
 0xa93   : >> { %v1791_v56 = vpop.permute.xlu1 %1790 }
 0xa94   : >> { %v1795_v0 = vsel %vm1794_vm3, %v1793_v12, %v1791_v56 }
 0xa95   : >> { %2404 = vmatmul.mubr.msk.f32.vlgmr.msra.gmra.mxu0 %vm1802_vm5, %v1795_v0 }
 0xb55   : >> { %v1872_v17 = vpop.f32.mrf.mxu0 }
 0xb56   : >> { %v1873_v58 = vadd.f32 %v3397_v42, %v1872_v17 }
 0xb57   : >> { %v2405_v21 = vpop.f32.mrf.mxu0 }
 0xb58   : >> { %2602 = vtanh.f32 %v1873_v58  ;;  %v2247_v62 = vmul.f32 -1.442695, %v1873_v58 }
 0xb5a   : >> { %2604 = vpow2.f32 %v2247_v62 }
 0xb65   : >> { %v2603_v29 = vpop.eup %2602 }
 0xb66   : >> { %1890 = vrot.lane.b32.xlu1 %v2603_v29, %s2931_s29 }
 0xb67   : >> { %v2605_v52 = vpop.eup %2604 }
 0xb68   : >> { %v1879_v63 = vadd.f32 1.0, %v2605_v52 }
 0xb6a   : >> { %2606 = vrcp.f32 %v1879_v63 }
 0xb77   : >> { %v2607_v20 = vpop.eup %2606 }
 0xb78   : >> { %v1888_v30 = vmul.f32 %v2607_v20, %v1886_v18 }
 0xbd8   : >> { %v1891_v16 = vpop.permute.xlu1 %1890 }
 0xbd9   : >> { %v1893_v22 = vmul.f32 %v2607_v20, %v1891_v16 }
 0xbdb   : >> { %1895 = vrot.lane.b32.xlu1 %v1893_v22, %s2929_s3 }
 0xbdf   : >> { %1905 = vrot.lane.b32.xlu1 %v3461_v53, %s2936_s18  ;;  %s2820_s18 = scalar_lea.vmem (%p716_p1), %s3738_s26, 128 }
 0xbe0   : > { %p2821_p3 = scmp.ne.s32.totalorder (%p716_p1), %s3738_s26, %s2820_s18 }
 0xbe2   : > { %p2822_p12 = pnand (%p716_p1), %p2821_p3, %p3888_p8 }
 0xbe3   : >> { %1012 = vrot.lane.b32.xlu1 %v3545_v59, %s2937_s2 }
 0xbe4   : > { %p2823_p7 = pneg (%p716_p1), %p2822_p12 }
 0xc4d   : >> { %v1896_v13 = vpop.permute.xlu1 %1895 }
 0xc4e   : >> { %v1898_v1 = vadd.f32 %v1896_v13, %v1888_v30 }
 0xc50   : >> { %2608 = vtanh.f32 %v1898_v1 }
 0xc51   : >> { %v1906_v23 = vpop.permute.xlu1 %1905 }
 0xc55   : >> { %v1013_v60 = vpop.permute.xlu1 %1012 }
 0xc56   : >> { %1016 = vst.msk [vmem:[#allocation3] sm:$0x3] %vm1015_vm15, %v1013_v60 }
 0xc5d   : >> { %v2609_v61 = vpop.eup %2608 }
 0xc5e   : >> { %1901 = vrot.lane.b32.xlu0 %v2609_v61, %s2931_s29 }
 0xcd0   : >> { %v1902_v55 = vpop.permute.xlu0 %1901 }
 0xcd1   : >> { %v1904_v14 = vmul.f32 %v2607_v20, %v1902_v55 }
 0xcd3   : >> { %v1908_v53 = vmul.f32 %v1906_v23, %v1904_v14 }
 0xcd5   : >> { %1915 = vrot.lane.b32.xlu0 %v1908_v53, %s2929_s3  ;;  %s2256_s3 = sshll.u32 (%p716_p1), %s3047_s27, 7  ;;  %s2826_s27 = scalar_lea.vmem (%p716_p1), %s2825_s30, 256 }
 0xcd6   : > { %s3735_s28 = scalar_lea.hbm (%p716_p1), %s3887_s6, %s2256_s3  ;;  %p2828_p5 = scmp.lt.s32.totalorder (%p716_p1), %s2826_s27, %s2820_s18 }
 0xcd8   : > { %p2829_p4 = por (%p716_p1), %p2828_p5, %p2827_p2 }
 0xcd9   : >> { %1910 = vrot.lane.b32.xlu0 %v1898_v1, %s2937_s2 }
 0xcda   : > { %p2830_p6 = pnand (%p716_p1), %p2829_p4, %p2823_p7 }
 0xd47   : >> { %v1916_v59 = vpop.permute.xlu0 %1915 }
 0xd48   : >> { %1918 = vst.msk [vmem:[#allocation4] sm:$0x3] %vm1015_vm15, %v1916_v59  ;;  %v1919_v54 = vsel %vm1301_vm0, %v1916_v59, %v1787_v57 }
 0xd49   : >> { %2423 = vmatmul.mubr.msk.f32.vlgmr.msra.gmra.mxu1 %vm1794_vm3, %v1919_v54 }
 0xd4b   : >> { %v1911_v19 = vpop.permute.xlu0 %1910 }
 0xd4c   : >> { %1913 = vst.msk [vmem:[#allocation5] sm:$0x3] %vm1015_vm15, %v1911_v19 }
 0xe08   : > { %718 = sbr.rel (!%p716_p1) target bundleno = 205 (0xcd), region = 179 }
 0xe09   : >> { %v1995_v15 = vpop.f32.mrf.mxu1 }
 0xe0a   : >> { %v1996_v24 = vadd.f32 %v3442_v51, %v1995_v15 }
 0xe0b   : >> { %v2424_v11 = vpop.f32.mrf.mxu1 }
 0xe0c   : >> { %2001 = vst.msk [vmem:[%s1999_s10] sm:$0x3] %vm2000_vm6, %v1996_v24 }
 0xe0d   : > { %2833 = shalt.err (!%p2830_p6)
}
 0xe0e   : > { %s2834_s19 = scalar_lea.hbm %s3735_s28, 128  ;;  %s2838_s10 = scalar_lea.hbm %s3887_s6, 256 }
 0xe0f   : > { %p2835_p9 = scmp.ne.s32.totalorder %s3735_s28, %s2834_s19  ;;  %p2839_p13 = scmp.lt.s32.totalorder %s3735_s28, %s3887_s6 }
 0xe10   : > { %p2840_p0 = scmp.lt.s32.totalorder %s2838_s10, %s2834_s19 }
 0xe11   : > { %p2836_p10 = pnand %p2835_p9, %p3888_p8 }
 0xe12   : > { %p2841_p1 = por %p2840_p0, %p2839_p13 }
 0xe13   : > { %p2837_p11 = pneg %p2836_p10 }
 0xe15   : > { %p2842_p3 = pnand %p2841_p1, %p2837_p11 }
 0xe17   : > { %2845 = shalt.err (!%p2842_p3)
}
 0xe18   : > { %s2939_s29 = smov 32   ;;  %s2940_s18 = smov 2  }
 0xe19   : > { %2455 = dma.vmem_to_hbm [thread:$0]  (%p3888_p8), %s3738_s26, 128, %s3735_s28, %s2010_s25, %s2939_s29, %s2939_s29, %s2940_s18  }
 0xe1a PF: > { %s2050_s5 = sand.u32 1, %s2892_s21   ;;  %p3889_p12 = scmp.ne.s32.totalorder %s3836_s17, 0 }
 0xe1b   : > { %p3890_p7 = scmp.ge.s32.totalorder %s2904_s24, 2  ;;  %s2051_s30 = scalar_lea.sflag [#allocation11], %s2050_s5 }
 0xe1d   : > { %p2484_p2 = pnand %p3890_p7, %p3889_p12 }
 0xe1f   : > { %p2485_p5 = pneg %p2484_p2 }
 0xe21   : > { %2887 = dma.done.wait (%p2485_p5), %s2051_s30, 128  }
 0xe22   : > { %2889 = vsyncadd (%p2485_p5), %s2051_s30, 4294967168  ;;  %s3891_s27 = sld [smem:[#allocation30_spill]]  ;;  %p34_p4 = scmp.ge.s32.totalorder %s3147_s0, 4  }
 0xe23   : > { %s3892_s21 = smov %s2896_s22  ;;  %s3893_s22 = smov %s2900_s23 }
 0xe24   : > { %s3895_s24 = smov %s3147_s0  ;;  %36 = sbr.rel (!%p34_p4) target bundleno = 20 (0x14), region = 190 }
 0xe28   : > { %s3894_s23 = smov %s3891_s27 }
 0xe29   :  { %2056 = vsyncpa [#allocation10], 1 }
 0xe2a   :  { %2058 = vsyncpa [#allocation10 + $0x1], 1 }
 0xe2b   :  { %2059 = vsyncpa [#allocation13], 1 }
 0xe2c   :  { %2060 = vsyncpa [#allocation16], 1 }
 0xe2d   :  { %2061 = vsyncpa [#allocation19], 1 }
 0xe2e   :  { %2062 = vsyncpa [#allocation22], 1 }
 0xe2f   :  { %2063 = vsyncpa [#allocation11], 1 }
 0xe30   :  { %2065 = vsyncpa [#allocation11 + $0x1], 1 }

</bundles_post_ra>
